<compile_context>
chip_gen: v6e
topology: v6e:2x2x1
jax: 0.10.0
libtpu: 0.0.40
codegen_flags: <defaults>
</compile_context>

<pallas_src>
import functools

import jax
import jax.numpy as jnp
from jax.experimental import pallas as pl
from jax.experimental.pallas import tpu as pltpu

_GELU_C = 0.7978845608028654  # sqrt(2/pi)


# ------------------------------------------------------------------
# Fused kernel: pool -> gather -> LN -> fc1 -> LN -> GELU -> fc2 -> sigmoid
# ------------------------------------------------------------------
def _fda_fused_kernel(x_ref, idx_ref, g1_ref, b1_ref, w1_ref, g2_ref, b2_ref,
                      w2_ref, o_ref, *, C, eps):
    R, KC = x_ref.shape          # R = batch_tile * P token rows, KC = ph*pw*C
    K = KC // C

    # ---- fused non-overlapping 2D max pool: K-1 vector max ops over the
    #      C-wide lane groups of each (already window-major) row.
    xw = x_ref[...]                                            # (R, K*C) f32
    pooled = xw[:, 0:C]
    for k in range(1, K):
        pooled = jnp.maximum(pooled, xw[:, k * C:(k + 1) * C])  # (R, C)

    # ---- per-batch-element patch permutation as a one-hot matmul (MXU).
    #      idx holds tile-local target rows (identity for the isom half), so
    #      gathered[r, :] = pooled[idx[r], :] exactly (f32 one-hot select).
    idx = idx_ref[...]                                         # (R, 1) int32
    onehot = (jax.lax.broadcasted_iota(jnp.int32, (R, R), 1) == idx)
    gathered = jnp.dot(onehot.astype(jnp.float32), pooled,
                       preferred_element_type=jnp.float32)     # (R, C)

    # ---- input LayerNorm over C (f32 elementwise: v5e VPU/EUP have no bf16)
    mu = jnp.mean(gathered, axis=-1, keepdims=True)
    xc = gathered - mu
    var = jnp.mean(xc * xc, axis=-1, keepdims=True)
    x1 = xc * jax.lax.rsqrt(var + eps) * g1_ref[...] + b1_ref[...]

    # ---- fc1 (no bias): bf16 operands, f32 accumulation on the MXU
    h = jnp.dot(x1.astype(jnp.bfloat16), w1_ref[...],
                preferred_element_type=jnp.float32)            # (R, Hd)

    # ---- fc LayerNorm over Hd
    mu2 = jnp.mean(h, axis=-1, keepdims=True)
    hc = h - mu2
    var2 = jnp.mean(hc * hc, axis=-1, keepdims=True)
    h1 = hc * jax.lax.rsqrt(var2 + eps) * g2_ref[...] + b2_ref[...]

    # ---- GELU (tanh approximation), f32
    g = 0.5 * h1 * (1.0 + jnp.tanh(_GELU_C * (h1 + 0.044715 * h1 * h1 * h1)))

    # ---- fc2 (no bias, out dim lane-padded to Lp) + sigmoid (EUP exp path)
    z = jnp.dot(g.astype(jnp.bfloat16), w2_ref[...],
                preferred_element_type=jnp.float32)            # (R, Lp)
    o_ref[...] = jax.nn.sigmoid(z).astype(o_ref.dtype)


# ------------------------------------------------------------------
# Wrapper: layout plumbing + single pallas_call
# ------------------------------------------------------------------
def fda_net_forward(params, mixed_features, patch_ref_indices, pool_size=(2, 2),
                    eps=1e-8, batch_tile=2):
    B, C, H, W = mixed_features.shape
    ph, pw = pool_size
    assert H % ph == 0 and W % pw == 0
    assert B % 2 == 0 and B % batch_tile == 0
    Hp, Wp = H // ph, W // pw
    P = Hp * Wp
    K = ph * pw
    half = B // 2
    Hd = params["w1"].shape[1]
    L = params["w2"].shape[1]
    Lp = max(128, ((L + 127) // 128) * 128)      # lane-dense output width
    R = batch_tile * P                           # token rows per grid step
    assert R % 8 == 0

    # Layout plumbing (stays in XLA, one transpose pass):
    # NCHW -> (B*P, K*C): row (b, hp, wp) holds its ph*pw pooling window as K
    # contiguous C-wide lane groups -> fully lane-dense kernel input.
    xr = mixed_features.reshape(B, C, Hp, ph, Wp, pw)
    xr = jnp.transpose(xr, (0, 2, 4, 3, 5, 1)).reshape(B * P, K * C)
    xr = xr.astype(jnp.float32)

    # Per-row gather targets: ori half uses patch_ref_indices, isom half identity.
    # Converted to *tile-local* row indices so the kernel can apply the whole
    # per-batch permutation as one block-diagonal one-hot matmul.
    ident = jnp.broadcast_to(jnp.arange(P, dtype=jnp.int32), (B - half, P))
    idx_full = jnp.concatenate(
        [patch_ref_indices.astype(jnp.int32), ident], axis=0)          # (B, P)
    local_off = (jnp.arange(B, dtype=jnp.int32) % batch_tile)[:, None] * P
    tile_row_idx = (idx_full + local_off).reshape(B * P, 1)            # (B*P, 1)

    # Weights: bf16 MXU operands (halves weight DMA); fc2 padded to Lp columns.
    w1 = params["w1"].astype(jnp.bfloat16)                             # (C, Hd)
    w2 = jnp.zeros((Hd, Lp), jnp.bfloat16).at[:, :L].set(
        params["w2"].astype(jnp.bfloat16))                             # (Hd, Lp)
    g1, b1 = params["g1"], params["b1"]                                # (1, C) f32
    g2, b2 = params["g2"], params["b2"]                                # (1, Hd) f32

    out = pl.pallas_call(
        functools.partial(_fda_fused_kernel, C=C, eps=eps),
        out_shape=jax.ShapeDtypeStruct((B * P, Lp), jnp.float32),
        grid=(B // batch_tile,),
        in_specs=[
            pl.BlockSpec((R, K * C), lambda b: (b, 0)),   # patch windows
            pl.BlockSpec((R, 1), lambda b: (b, 0)),       # tile-local gather rows
            pl.BlockSpec((1, C), lambda b: (0, 0)),       # input_ln gamma
            pl.BlockSpec((1, C), lambda b: (0, 0)),       # input_ln beta
            pl.BlockSpec((C, Hd), lambda b: (0, 0)),      # fc1 weight (in, out) bf16
            pl.BlockSpec((1, Hd), lambda b: (0, 0)),      # fc_ln gamma
            pl.BlockSpec((1, Hd), lambda b: (0, 0)),      # fc_ln beta
            pl.BlockSpec((Hd, Lp), lambda b: (0, 0)),     # fc2 weight, lane-padded bf16
        ],
        out_specs=pl.BlockSpec((R, Lp), lambda b: (b, 0)),
        compiler_params=pltpu.CompilerParams(
            dimension_semantics=("parallel",),
            vmem_limit_bytes=32 * 1024 * 1024),
    )(xr, tile_row_idx, g1, b1, w1, g2, b2, w2)

    # Metadata reshape + tiny slice to drop the lane padding.
    return out.reshape(B, P, Lp)[:, :, :L]


# ------------------------------------------------------------------
# Deterministic parameter init (shapes from FdaNet.__init__)
# ------------------------------------------------------------------
def init_params(key, embedding_dim, hidden_units, latent_features):
    k1, k2, k3, k4, k5, k6 = jax.random.split(key, 6)
    return {
        "g1": 1.0 + 0.1 * jax.random.normal(k1, (1, embedding_dim), jnp.float32),
        "b1": 0.1 * jax.random.normal(k2, (1, embedding_dim), jnp.float32),
        "w1": 0.05 * jax.random.normal(k3, (embedding_dim, hidden_units), jnp.float32),
        "g2": 1.0 + 0.1 * jax.random.normal(k4, (1, hidden_units), jnp.float32),
        "b2": 0.1 * jax.random.normal(k5, (1, hidden_units), jnp.float32),
        "w2": 0.05 * jax.random.normal(k6, (hidden_units, latent_features), jnp.float32),
    }


# ------------------------------------------------------------------
# Pure-JAX reference (mirrors kernel precision: bf16 operands at the dots)
# ------------------------------------------------------------------
def reference_forward(params, mixed_features, patch_ref_indices, pool_size=(2, 2),
                      eps=1e-8):
    B, C, H, W = mixed_features.shape
    ph, pw = pool_size
    pooled = mixed_features.reshape(B, C, H // ph, ph, W // pw, pw).max(axis=(3, 5))
    patches = jnp.transpose(pooled, (0, 2, 3, 1)).reshape(B, -1, C)
    half = B // 2
    ori = jnp.take_along_axis(patches[:half], patch_ref_indices[:, :, None], axis=1)
    x = jnp.concatenate([ori, patches[half:]], axis=0)

    def ln(v, g, b):
        mu = v.mean(-1, keepdims=True)
        var = ((v - mu) ** 2).mean(-1, keepdims=True)
        return (v - mu) * jax.lax.rsqrt(var + eps) * g + b

    x = ln(x, params["g1"], params["b1"])
    h = jnp.dot(x.astype(jnp.bfloat16), params["w1"].astype(jnp.bfloat16),
                preferred_element_type=jnp.float32)
    h = ln(h, params["g2"], params["b2"])
    h = 0.5 * h * (1.0 + jnp.tanh(_GELU_C * (h + 0.044715 * h ** 3)))
    z = jnp.dot(h.astype(jnp.bfloat16), params["w2"].astype(jnp.bfloat16),
                preferred_element_type=jnp.float32)
    return jax.nn.sigmoid(z)


if __name__ == "__main__":
    B, C, H, W = 4, 32, 16, 16                 # batch must be even (ori/isom split)
    hidden_units, latent_features = 64, 16
    pool_size = (2, 2)                         # nn.MaxPool2d(2, 2)
    P = (H // pool_size[0]) * (W // pool_size[1])

    key = jax.random.PRNGKey(0)
    kx, ki, kp = jax.random.split(key, 3)
    mixed_features = jax.random.normal(kx, (B, C, H, W), jnp.float32)
    patch_ref_indices = jnp.stack(
        [jax.random.permutation(k, P) for k in jax.random.split(ki, B // 2)]
    ).astype(jnp.int32)                        # (B//2, P)
    params = init_params(kp, C, hidden_units, latent_features)

    out = fda_net_forward(params, mixed_features, patch_ref_indices, pool_size,
                          batch_tile=2)
    out = jax.block_until_ready(out)

    ref = reference_forward(params, mixed_features, patch_ref_indices, pool_size)
    assert out.shape == (B, P, latent_features), out.shape
    assert bool(jnp.all(jnp.isfinite(out)))
    max_err = float(jnp.max(jnp.abs(out - ref)))
    assert jnp.allclose(out, ref, atol=2e-3, rtol=2e-3), f"max_err={max_err}"

    print("KERNEL_OK")
</pallas_src>

<mosaic_0001>
module attributes {stable_mosaic.version = 11 : i64} {
  func.func @_fda_fused_kernel(%arg0: i32, %arg1: memref<128x128xf32, #tpu.memory_space<vmem>>, %arg2: memref<128x1xi32, #tpu.memory_space<vmem>>, %arg3: memref<1x32xf32, #tpu.memory_space<vmem>>, %arg4: memref<1x32xf32, #tpu.memory_space<vmem>>, %arg5: memref<32x64xbf16, #tpu.memory_space<vmem>>, %arg6: memref<1x64xf32, #tpu.memory_space<vmem>>, %arg7: memref<1x64xf32, #tpu.memory_space<vmem>>, %arg8: memref<64x128xbf16, #tpu.memory_space<vmem>>, %arg9: memref<128x128xf32, #tpu.memory_space<vmem>>) attributes {dimension_semantics = [#tpu.dimension_semantics<parallel>], iteration_bounds = array<i64: 2>, scalar_prefetch = 0 : i64, scratch_operands = 0 : i64, tpu.core_type = #tpu.core_type<tc>, window_params = [{transform_indices = @transform_0, window_bounds = array<i64: 128, 128>}, {transform_indices = @transform_1, window_bounds = array<i64: 128, 1>}, {pipeline_mode = #tpu.pipeline_mode<synchronous>, transform_indices = @transform_2, window_bounds = array<i64: 1, 32>}, {pipeline_mode = #tpu.pipeline_mode<synchronous>, transform_indices = @transform_3, window_bounds = array<i64: 1, 32>}, {pipeline_mode = #tpu.pipeline_mode<synchronous>, transform_indices = @transform_4, window_bounds = array<i64: 32, 64>}, {pipeline_mode = #tpu.pipeline_mode<synchronous>, transform_indices = @transform_5, window_bounds = array<i64: 1, 64>}, {pipeline_mode = #tpu.pipeline_mode<synchronous>, transform_indices = @transform_6, window_bounds = array<i64: 1, 64>}, {pipeline_mode = #tpu.pipeline_mode<synchronous>, transform_indices = @transform_7, window_bounds = array<i64: 64, 128>}, {transform_indices = @transform_8, window_bounds = array<i64: 128, 128>}]} {
    %c0 = arith.constant 0 : index
    %c0_0 = arith.constant 0 : index
    %0 = vector.load %arg1[%c0, %c0_0] : memref<128x128xf32, #tpu.memory_space<vmem>>, vector<128x128xf32>
    %1 = vector.extract_strided_slice %0 {offsets = [0, 0], sizes = [128, 32], strides = [1, 1]} : vector<128x128xf32> to vector<128x32xf32>
    %2 = vector.extract_strided_slice %0 {offsets = [0, 32], sizes = [128, 32], strides = [1, 1]} : vector<128x128xf32> to vector<128x32xf32>
    %3 = arith.maximumf %1, %2 : vector<128x32xf32>
    %4 = vector.extract_strided_slice %0 {offsets = [0, 64], sizes = [128, 32], strides = [1, 1]} : vector<128x128xf32> to vector<128x32xf32>
    %5 = arith.maximumf %3, %4 : vector<128x32xf32>
    %6 = vector.extract_strided_slice %0 {offsets = [0, 96], sizes = [128, 32], strides = [1, 1]} : vector<128x128xf32> to vector<128x32xf32>
    %7 = arith.maximumf %5, %6 : vector<128x32xf32>
    %c0_1 = arith.constant 0 : index
    %c0_2 = arith.constant 0 : index
    %8 = vector.load %arg2[%c0_1, %c0_2] : memref<128x1xi32, #tpu.memory_space<vmem>>, vector<128x1xi32>
    %9 = tpu.iota {dimensions = array<i32: 1>} : vector<128x128xi32>
    %10 = vector.broadcast %8 : vector<128x1xi32> to vector<128x128xi32>
    %11 = arith.cmpi eq, %9, %10 : vector<128x128xi32>
    %12 = arith.extui %11 : vector<128x128xi1> to vector<128x128xi32>
    %13 = arith.sitofp %12 : vector<128x128xi32> to vector<128x128xf32>
    %cst = arith.constant dense<0.000000e+00> : vector<128x32xf32>
    %14 = tpu.matmul %13, %7, %cst {dimension_numbers = #tpu.dot_dimension_numbers<[1], [0], [0], [1], [0, 0, 1, 1], [], []>} : vector<128x128xf32>, vector<128x32xf32>, vector<128x32xf32> -> vector<128x32xf32>
    %cst_3 = arith.constant dense<0.000000e+00> : vector<128xf32>
    %15 = vector.multi_reduction <add>, %14, %cst_3 [1] : vector<128x32xf32> to vector<128xf32>
    %16 = vector.shape_cast %15 : vector<128xf32> to vector<128x1xf32>
    %cst_4 = arith.constant 3.200000e+01 : f32
    %17 = vector.broadcast %cst_4 : f32 to vector<128x1xf32>
    %18 = arith.divf %16, %17 : vector<128x1xf32>
    %19 = vector.broadcast %18 : vector<128x1xf32> to vector<128x32xf32>
    %20 = arith.subf %14, %19 : vector<128x32xf32>
    %21 = arith.mulf %20, %20 : vector<128x32xf32>
    %cst_5 = arith.constant dense<0.000000e+00> : vector<128xf32>
    %22 = vector.multi_reduction <add>, %21, %cst_5 [1] : vector<128x32xf32> to vector<128xf32>
    %23 = vector.shape_cast %22 : vector<128xf32> to vector<128x1xf32>
    %cst_6 = arith.constant 3.200000e+01 : f32
    %24 = vector.broadcast %cst_6 : f32 to vector<128x1xf32>
    %25 = arith.divf %23, %24 : vector<128x1xf32>
    %cst_7 = arith.constant 9.99999993E-9 : f32
    %26 = vector.broadcast %cst_7 : f32 to vector<128x1xf32>
    %27 = arith.addf %25, %26 : vector<128x1xf32>
    %28 = math.rsqrt %27 : vector<128x1xf32>
    %29 = vector.broadcast %28 : vector<128x1xf32> to vector<128x32xf32>
    %30 = arith.mulf %20, %29 : vector<128x32xf32>
    %c0_8 = arith.constant 0 : index
    %c0_9 = arith.constant 0 : index
    %31 = vector.load %arg3[%c0_8, %c0_9] : memref<1x32xf32, #tpu.memory_space<vmem>>, vector<1x32xf32>
    %32 = vector.broadcast %31 : vector<1x32xf32> to vector<128x32xf32>
    %33 = arith.mulf %30, %32 : vector<128x32xf32>
    %c0_10 = arith.constant 0 : index
    %c0_11 = arith.constant 0 : index
    %34 = vector.load %arg4[%c0_10, %c0_11] : memref<1x32xf32, #tpu.memory_space<vmem>>, vector<1x32xf32>
    %35 = vector.broadcast %34 : vector<1x32xf32> to vector<128x32xf32>
    %36 = arith.addf %33, %35 : vector<128x32xf32>
    %37 = arith.truncf %36 : vector<128x32xf32> to vector<128x32xbf16>
    %c0_12 = arith.constant 0 : index
    %c0_13 = arith.constant 0 : index
    %38 = vector.load %arg5[%c0_12, %c0_13] : memref<32x64xbf16, #tpu.memory_space<vmem>>, vector<32x64xbf16>
    %cst_14 = arith.constant dense<0.000000e+00> : vector<128x64xf32>
    %39 = tpu.matmul %37, %38, %cst_14 {dimension_numbers = #tpu.dot_dimension_numbers<[1], [0], [0], [1], [0, 0, 1, 1], [], []>} : vector<128x32xbf16>, vector<32x64xbf16>, vector<128x64xf32> -> vector<128x64xf32>
    %cst_15 = arith.constant dense<0.000000e+00> : vector<128xf32>
    %40 = vector.multi_reduction <add>, %39, %cst_15 [1] : vector<128x64xf32> to vector<128xf32>
    %41 = vector.shape_cast %40 : vector<128xf32> to vector<128x1xf32>
    %cst_16 = arith.constant 6.400000e+01 : f32
    %42 = vector.broadcast %cst_16 : f32 to vector<128x1xf32>
    %43 = arith.divf %41, %42 : vector<128x1xf32>
    %44 = vector.broadcast %43 : vector<128x1xf32> to vector<128x64xf32>
    %45 = arith.subf %39, %44 : vector<128x64xf32>
    %46 = arith.mulf %45, %45 : vector<128x64xf32>
    %cst_17 = arith.constant dense<0.000000e+00> : vector<128xf32>
    %47 = vector.multi_reduction <add>, %46, %cst_17 [1] : vector<128x64xf32> to vector<128xf32>
    %48 = vector.shape_cast %47 : vector<128xf32> to vector<128x1xf32>
    %cst_18 = arith.constant 6.400000e+01 : f32
    %49 = vector.broadcast %cst_18 : f32 to vector<128x1xf32>
    %50 = arith.divf %48, %49 : vector<128x1xf32>
    %cst_19 = arith.constant 9.99999993E-9 : f32
    %51 = vector.broadcast %cst_19 : f32 to vector<128x1xf32>
    %52 = arith.addf %50, %51 : vector<128x1xf32>
    %53 = math.rsqrt %52 : vector<128x1xf32>
    %54 = vector.broadcast %53 : vector<128x1xf32> to vector<128x64xf32>
    %55 = arith.mulf %45, %54 : vector<128x64xf32>
    %c0_20 = arith.constant 0 : index
    %c0_21 = arith.constant 0 : index
    %56 = vector.load %arg6[%c0_20, %c0_21] : memref<1x64xf32, #tpu.memory_space<vmem>>, vector<1x64xf32>
    %57 = vector.broadcast %56 : vector<1x64xf32> to vector<128x64xf32>
    %58 = arith.mulf %55, %57 : vector<128x64xf32>
    %c0_22 = arith.constant 0 : index
    %c0_23 = arith.constant 0 : index
    %59 = vector.load %arg7[%c0_22, %c0_23] : memref<1x64xf32, #tpu.memory_space<vmem>>, vector<1x64xf32>
    %60 = vector.broadcast %59 : vector<1x64xf32> to vector<128x64xf32>
    %61 = arith.addf %58, %60 : vector<128x64xf32>
    %cst_24 = arith.constant 5.000000e-01 : f32
    %62 = vector.broadcast %cst_24 : f32 to vector<128x64xf32>
    %63 = arith.mulf %62, %61 : vector<128x64xf32>
    %cst_25 = arith.constant 4.471500e-02 : f32
    %64 = vector.broadcast %cst_25 : f32 to vector<128x64xf32>
    %65 = arith.mulf %64, %61 : vector<128x64xf32>
    %66 = arith.mulf %65, %61 : vector<128x64xf32>
    %67 = arith.mulf %66, %61 : vector<128x64xf32>
    %68 = arith.addf %61, %67 : vector<128x64xf32>
    %cst_26 = arith.constant 0.797884583 : f32
    %69 = vector.broadcast %cst_26 : f32 to vector<128x64xf32>
    %70 = arith.mulf %69, %68 : vector<128x64xf32>
    %71 = math.tanh %70 : vector<128x64xf32>
    %cst_27 = arith.constant 1.000000e+00 : f32
    %72 = vector.broadcast %cst_27 : f32 to vector<128x64xf32>
    %73 = arith.addf %72, %71 : vector<128x64xf32>
    %74 = arith.mulf %63, %73 : vector<128x64xf32>
    %75 = arith.truncf %74 : vector<128x64xf32> to vector<128x64xbf16>
    %c0_28 = arith.constant 0 : index
    %c0_29 = arith.constant 0 : index
    %76 = vector.load %arg8[%c0_28, %c0_29] : memref<64x128xbf16, #tpu.memory_space<vmem>>, vector<64x128xbf16>
    %cst_30 = arith.constant dense<0.000000e+00> : vector<128x128xf32>
    %77 = tpu.matmul %75, %76, %cst_30 {dimension_numbers = #tpu.dot_dimension_numbers<[1], [0], [0], [1], [0, 0, 1, 1], [], []>} : vector<128x64xbf16>, vector<64x128xbf16>, vector<128x128xf32> -> vector<128x128xf32>
    %78 = arith.negf %77 : vector<128x128xf32>
    %79 = math.exp %78 : vector<128x128xf32>
    %cst_31 = arith.constant 1.000000e+00 : f32
    %80 = vector.broadcast %cst_31 : f32 to vector<128x128xf32>
    %81 = arith.addf %80, %79 : vector<128x128xf32>
    %82 = arith.divf %80, %81 : vector<128x128xf32>
    %c0_32 = arith.constant 0 : index
    %c0_33 = arith.constant 0 : index
    %83 = vector.load %arg9[%c0_32, %c0_33] : memref<128x128xf32, #tpu.memory_space<vmem>>, vector<128x128xf32>
    tpu.vector_store %arg9[%c0_32, %c0_33], %82 {strides = array<i32>} : memref<128x128xf32, #tpu.memory_space<vmem>>, vector<128x128xf32>,
    return
  }
  func.func @transform_0(%arg0: i32) -> (i32, i32) {
    %c0_i32 = arith.constant 0 : i32
    %c0_i32_0 = arith.constant 0 : i32
    return %arg0, %c0_i32 : i32, i32
  }
  func.func @transform_1(%arg0: i32) -> (i32, i32) {
    %c0_i32 = arith.constant 0 : i32
    %c0_i32_0 = arith.constant 0 : i32
    return %arg0, %c0_i32 : i32, i32
  }
  func.func @transform_2(%arg0: i32) -> (i32, i32) {
    %c0_i32 = arith.constant 0 : i32
    %c0_i32_0 = arith.constant 0 : i32
    %c0_i32_1 = arith.constant 0 : i32
    return %c0_i32, %c0_i32_0 : i32, i32
  }
  func.func @transform_3(%arg0: i32) -> (i32, i32) {
    %c0_i32 = arith.constant 0 : i32
    %c0_i32_0 = arith.constant 0 : i32
    %c0_i32_1 = arith.constant 0 : i32
    return %c0_i32, %c0_i32_0 : i32, i32
  }
  func.func @transform_4(%arg0: i32) -> (i32, i32) {
    %c0_i32 = arith.constant 0 : i32
    %c0_i32_0 = arith.constant 0 : i32
    %c0_i32_1 = arith.constant 0 : i32
    return %c0_i32, %c0_i32_0 : i32, i32
  }
  func.func @transform_5(%arg0: i32) -> (i32, i32) {
    %c0_i32 = arith.constant 0 : i32
    %c0_i32_0 = arith.constant 0 : i32
    %c0_i32_1 = arith.constant 0 : i32
    return %c0_i32, %c0_i32_0 : i32, i32
  }
  func.func @transform_6(%arg0: i32) -> (i32, i32) {
    %c0_i32 = arith.constant 0 : i32
    %c0_i32_0 = arith.constant 0 : i32
    %c0_i32_1 = arith.constant 0 : i32
    return %c0_i32, %c0_i32_0 : i32, i32
  }
  func.func @transform_7(%arg0: i32) -> (i32, i32) {
    %c0_i32 = arith.constant 0 : i32
    %c0_i32_0 = arith.constant 0 : i32
    %c0_i32_1 = arith.constant 0 : i32
    return %c0_i32, %c0_i32_0 : i32, i32
  }
  func.func @transform_8(%arg0: i32) -> (i32, i32) {
    %c0_i32 = arith.constant 0 : i32
    %c0_i32_0 = arith.constant 0 : i32
    return %arg0, %c0_i32 : i32, i32
  }
}

</mosaic_0001>

<bundles_post_ra>
// kernel: tpu_custom_call.1
= control target key start
LH: loop header
LB: loop body
LE: loop exit
PB: predicated region body
PF: predicated region fallthrough
CT: control target
= control target key end

     0   :  { %13 = vsyncpa [#allocation3], 0  ;;  %s3574_s0 = inlined_call_operand.vmem [shape: f32[256,128], index: 0, kind: input, shape index: {}]   ;;  %s3575_s1 = inlined_call_operand.vmem [shape: s32[256,1], index: 1, kind: input, shape index: {}]   ;;  %s3576_s2 = inlined_call_operand.vmem [shape: f32[1,32], index: 2, kind: input, shape index: {}]   ;;  %s3577_s3 = inlined_call_operand.vmem [shape: f32[1,32], index: 3, kind: input, shape index: {}]   ;;  %s3578_s4 = inlined_call_operand.hbm [shape: bf16[32,64], index: 4, kind: input, shape index: {}]   ;;  %s3579_s5 = inlined_call_operand.vmem [shape: f32[1,64], index: 5, kind: input, shape index: {}]   ;;  %s3580_s6 = inlined_call_operand.vmem [shape: f32[1,64], index: 6, kind: input, shape index: {}]   ;;  %s3581_s7 = inlined_call_operand.hbm [shape: bf16[64,128], index: 7, kind: input, shape index: {}]   ;;  %s3582_s8 = inlined_call_operand.hbm [shape: f32[256,128], index: 8, kind: output, shape index: {}]  }
   0x1   :  { %14 = vsyncpa [#allocation6], 0 }
   0x2   :  { %15 = vsyncpa [#allocation4], 0 }
   0x3   :  { %17 = vsyncpa [#allocation4 + $0x1], 0  ;;  %s2690_s27 = smov 0   ;;  %s2692_s28 = smov 0  }
   0x4   :  { %s2694_s29 = smov 0   ;;  %s2696_s30 = smov 0  }
   0x5 LB: > { %s2711_s9 = sadd.s32 4294967295, %s2631_s30   ;;  %s2027_s10 = sadd.s32 4294967294, %s2631_s30   ;;  %s2631_s30 = sphi %s2696_s30, %s3596_s30   ;;  %s2627_s29 = sphi %s2694_s29, %s3595_s29   ;;  %s2623_s28 = sphi %s2692_s28, %s3594_s28   ;;  %s2619_s27 = sphi %s2690_s27, %s3593_s27  }
   0x6   : > { %s2715_s11 = sadd.s32 1, %s2631_s30   ;;  %s208_s12 = sadd.s32 1, %s2627_s29 }
   0x7   : > { %s205_s13 = ssub.s32 %s2631_s30, %s2715_s11  ;;  %p218_p0 = scmp.ne.s32.totalorder %s2627_s29, %s2623_s28 }
   0x8   : > { %p206_p1 = scmp.eq.s32.totalorder %s205_s13, 0  ;;  %p219_p2 = scmp.eq.s32.totalorder %s2711_s9, 1 }
   0x9   : > { %p224_p3 = scmp.ne.s32.totalorder %s2623_s28, %s2619_s27  ;;  %p225_p4 = scmp.eq.s32.totalorder %s2027_s10, 1 }
   0xa   : > { %s2726_s14 = scalar_select %p206_p1, %s2627_s29, %s208_s12  }
   0xb   : > { %p2728_p5 = por %p219_p2, %p218_p0  ;;  %p2732_p6 = por %p225_p4, %p224_p3 }
   0xc   : > { %p2028_p7 = scmp.ge.s32.totalorder %s2631_s30, 1  ;;  %p232_p8 = scmp.lt.s32.totalorder %s2631_s30, 3 }
   0xd   : > { %s3585_s16 = scalar_select %p2732_p6, 1, 0 }
   0xe   : > { %p3583_p9 = scmp.eq.s32.totalorder %s2711_s9, 0  ;;  %p2739_p10 = pnand %p2028_p7, %p232_p8 }
   0xf   : > { %s2633_s18 = smov [#allocation2]   ;;  %s2634_s21 = smov [#allocation5]  }
  0x10   : > { %s250_s19 = sshll.u32 %s2633_s18, 4  ;;  %p2284_p11 = pneg %p2739_p10  ;;  %s251_s19 = int_to_ptr.vmem [resolvable:$true] %s250_s19 }
  0x11   : > { %s269_s22 = sshll.u32 %s2634_s21, 4  ;;  %s2522_s23 = scalar_lea.vmem %s251_s19, 256  ;;  %s270_s22 = int_to_ptr.vmem [resolvable:$true] %s269_s22 }
  0x12   : > { %p2747_p12 = pnand %p3583_p9, %p2284_p11  ;;  %p2523_p0 = scmp.ne.s32.totalorder %s251_s19, %s2522_s23 }
  0x13   : > { %p2530_p3 = scmp.lt.s32.totalorder %s251_s19, %s251_s19  ;;  %p2531_p4 = scmp.lt.s32.totalorder %s2522_s23, %s2522_s23 }
  0x14   : > { %p2513_p13 = pneg %p2747_p12 }
  0x15   : > { %p2532_p7 = por %p2531_p4, %p2530_p3 }
  0x16   : > { %p2525_p1 = pnand %p2523_p0, %p2513_p13 }
  0x18   : > { %p2526_p2 = pneg %p2525_p1 }
  0x1a   : > { %p2533_p8 = pnand %p2532_p7, %p2526_p2 }
  0x1c   : > { %2536 = shalt.err (!%p2533_p8)
}
  0x1d   : > { %s2635_s24 = smov 64   ;;  %s2636_s25 = smov 4  }
  0x1e   : > { %2287 = dma.hbm_to_vmem [thread:$0]  (!%p2747_p12), %s3578_s4, 256, %s251_s19, [#allocation3], %s2635_s24, %s2635_s24, %s2636_s25  }
  0x1f   : > { %s2548_s12 = scalar_lea.vmem %s270_s22, 512  ;;  %p2556_p9 = scmp.lt.s32.totalorder %s270_s22, %s270_s22 }
  0x20   : > { %p2549_p11 = scmp.ne.s32.totalorder %s270_s22, %s2548_s12  ;;  %p2557_p6 = scmp.lt.s32.totalorder %s2548_s12, %s2548_s12 }
  0x22   : > { %p2551_p0 = pnand %p2549_p11, %p2513_p13  ;;  %p2558_p3 = por %p2557_p6, %p2556_p9 }
  0x24   : > { %p2552_p1 = pneg %p2551_p0 }
  0x26   : > { %p2559_p2 = pnand %p2558_p3, %p2552_p1 }
  0x28   : > { %2562 = shalt.err (!%p2559_p2)
}
  0x29   : > { %2290 = dma.hbm_to_vmem [thread:$0]  (!%p2747_p12), %s3581_s7, 512, %s270_s22, [#allocation6], %s2635_s24, %s2635_s24, %s2636_s25  }
  0x2a   : > { %303 = sbr.rel (%p2739_p10) target bundleno = 1609 (0x649), region = 52  ;;  %p3588_p4 = scmp.eq.s32.totalorder (!%p2739_p10), %s2711_s9, 0 }
  0x2f   : > { %2606 = dma.done.wait (%p3588_p4), [#allocation3], 256   ;;  %p3589_p13 = pmov %p3588_p4 }
  0x30   : > { %p3590_p7 = pmov %p3588_p4 }
  0x31   : > { %2608 = vsyncadd (%p3589_p13), [#allocation3], 4294967040 }
  0x32   : > { %2610 = dma.done.wait (%p3590_p7), [#allocation6], 512   ;;  %p3591_p6 = pmov %p3588_p4 }
  0x33   : > { %s2036_s19 = sshll.u32 %s2711_s9, 4  ;;  %v2637_v0 = vmov 0   ;;  %s2638_s23 = smov 64  }
  0x34   : > { %2612 = vsyncadd (%p3591_p6), [#allocation6], 4294966784  ;;  %p347_p9 = scmp.lt.s32.totalorder %s2036_s19, 31  ;;  %2343 = vset.pattern.permute.xlu1 %v2637_v0  ;;  %2344 = vset.pattern.permute.xlu0 %v2637_v0  ;;  %s2639_s24 = smov 96  }
  0x35   : > { %s2640_s25 = smov 32   ;;  %s2119_s10 = sshll.u32 %s2711_s9, 11 }
  0x36   : > { %s3598_s19 = smov (!%p347_p9, %s2036_s19), 31  ;;  %s2642_s20 = smov [#allocation7]  }
  0x37   : > { %s2037_s17 = sshll.u32 %s3598_s19, 3  ;;  %s3526_s19 = scalar_lea.hbm %s3582_s8, %s2119_s10 }
  0x38   : > { %s2788_s22 = scalar_lea.vmem %s3574_s0, %s2037_s17  ;;  %s2927_s12 = scalar_lea.vmem %s3575_s1, %s2037_s17 }
  0x39   : > { %v2791_v1 = vld [vmem:[%s2788_s22 + $0x78] sm:$0xff]  ;;  %v2798_v2 = vld [vmem:[%s2788_s22 + $0x70] sm:$0xff]  ;;  %v2801_v3 = vld [vmem:[%s2788_s22 + $0x68] sm:$0xff]  ;;  %s2567_s21 = sshll.u32 %s2642_s20, 4  ;;  %s2568_s21 = int_to_ptr.vmem [resolvable:$false] %s2567_s21 }
  0x3a   : > { %486 = vrot.lane.b32.xlu1 %v2791_v1, %s2638_s23  ;;  %422 = vrot.lane.b32.xlu0 %v2791_v1, %s2639_s24  ;;  %v2812_v4 = vld [vmem:[%s2788_s22 + $0x60] sm:$0xff]  ;;  %v2819_v5 = vld [vmem:[%s2788_s22 + $0x58] sm:$0xff] }
  0x3b   : > { %v2830_v6 = vld [vmem:[%s2788_s22 + $0x50] sm:$0xff]  ;;  %v2837_v7 = vld [vmem:[%s2788_s22 + $0x48] sm:$0xff]  ;;  %v2848_v8 = vld [vmem:[%s2788_s22 + $0x40] sm:$0xff] }
  0x3c   : > { %v2855_v9 = vld [vmem:[%s2788_s22 + $0x38] sm:$0xff]  ;;  %v2866_v10 = vld [vmem:[%s2788_s22 + $0x30] sm:$0xff]  ;;  %v2873_v11 = vld [vmem:[%s2788_s22 + $0x28] sm:$0xff] }
  0x3d   : > { %v2884_v12 = vld [vmem:[%s2788_s22 + $0x20] sm:$0xff]  ;;  %v2891_v13 = vld [vmem:[%s2788_s22 + $0x18] sm:$0xff]  ;;  %v2902_v14 = vld [vmem:[%s2788_s22 + $0x10] sm:$0xff] }
  0x3e   : > { %420 = vrot.lane.b32.xlu0 %v2798_v2, %s2639_s24  ;;  %418 = vrot.lane.b32.xlu1 %v2801_v3, %s2639_s24  ;;  %v2909_v15 = vld [vmem:[%s2788_s22 + $0x8] sm:$0xff]  ;;  %v2920_v16 = vld [vmem:[%s2788_s22] sm:$0xff]  ;;  %s2569_s22 = scalar_lea.vmem %s2568_s21, 4096 }
  0x3f   : > { %v584_v17 = vld [vmem:[%s2927_s12] sm:$0xff]  ;;  %v585_v18 = vld [vmem:[%s2927_s12 + $0x8] sm:$0xff]  ;;  %v586_v19 = vld [vmem:[%s2927_s12 + $0x10] sm:$0xff] }
  0x40   : > { %v587_v20 = vld [vmem:[%s2927_s12 + $0x18] sm:$0xff]  ;;  %v588_v21 = vld [vmem:[%s2927_s12 + $0x20] sm:$0xff]  ;;  %v589_v22 = vld [vmem:[%s2927_s12 + $0x28] sm:$0xff] }
  0x41   : > { %v590_v23 = vld [vmem:[%s2927_s12 + $0x30] sm:$0xff]  ;;  %v591_v24 = vld [vmem:[%s2927_s12 + $0x38] sm:$0xff]  ;;  %v592_v25 = vld [vmem:[%s2927_s12 + $0x40] sm:$0xff] }
  0x42   : > { %484 = vrot.lane.b32.xlu0 %v2798_v2, %s2638_s23  ;;  %550 = vrot.lane.b32.xlu1 %v2791_v1, %s2640_s25  ;;  %v593_v26 = vld [vmem:[%s2927_s12 + $0x48] sm:$0xff]  ;;  %v594_v27 = vld [vmem:[%s2927_s12 + $0x50] sm:$0xff] }
  0x43   : > { %v595_v28 = vld [vmem:[%s2927_s12 + $0x58] sm:$0xff]  ;;  %v596_v32 = vld [vmem:[%s2927_s12 + $0x60] sm:$0xff]  ;;  %v597_v33 = vld [vmem:[%s2927_s12 + $0x68] sm:$0xff] }
  0x44   : > { %v598_v36 = vld [vmem:[%s2927_s12 + $0x70] sm:$0xff]  ;;  %v599_v37 = vld [vmem:[%s2927_s12 + $0x78] sm:$0xff] }
  0x46   : > { %482 = vrot.lane.b32.xlu1 %v2801_v3, %s2638_s23  ;;  %416 = vrot.lane.b32.xlu0 %v2812_v4, %s2639_s24 }
  0x4a   : > { %548 = vrot.lane.b32.xlu0 %v2798_v2, %s2640_s25  ;;  %414 = vrot.lane.b32.xlu1 %v2819_v5, %s2639_s24 }
  0x4e   : > { %480 = vrot.lane.b32.xlu0 %v2812_v4, %s2638_s23  ;;  %546 = vrot.lane.b32.xlu1 %v2801_v3, %s2640_s25 }
  0x52   : > { %478 = vrot.lane.b32.xlu1 %v2819_v5, %s2638_s23  ;;  %412 = vrot.lane.b32.xlu0 %v2830_v6, %s2639_s24 }
  0x56   : > { %544 = vrot.lane.b32.xlu0 %v2812_v4, %s2640_s25  ;;  %410 = vrot.lane.b32.xlu1 %v2837_v7, %s2639_s24 }
  0x5a   : > { %476 = vrot.lane.b32.xlu0 %v2830_v6, %s2638_s23  ;;  %542 = vrot.lane.b32.xlu1 %v2819_v5, %s2640_s25 }
  0x5e   : > { %474 = vrot.lane.b32.xlu1 %v2837_v7, %s2638_s23  ;;  %408 = vrot.lane.b32.xlu0 %v2848_v8, %s2639_s24 }
  0x62   : > { %540 = vrot.lane.b32.xlu0 %v2830_v6, %s2640_s25  ;;  %406 = vrot.lane.b32.xlu1 %v2855_v9, %s2639_s24 }
  0x66   : > { %472 = vrot.lane.b32.xlu0 %v2848_v8, %s2638_s23  ;;  %538 = vrot.lane.b32.xlu1 %v2837_v7, %s2640_s25 }
  0x6a   : > { %470 = vrot.lane.b32.xlu1 %v2855_v9, %s2638_s23  ;;  %404 = vrot.lane.b32.xlu0 %v2866_v10, %s2639_s24 }
  0x6e   : > { %536 = vrot.lane.b32.xlu0 %v2848_v8, %s2640_s25  ;;  %402 = vrot.lane.b32.xlu1 %v2873_v11, %s2639_s24 }
  0x72   : > { %468 = vrot.lane.b32.xlu0 %v2866_v10, %s2638_s23  ;;  %534 = vrot.lane.b32.xlu1 %v2855_v9, %s2640_s25 }
  0x76   : > { %466 = vrot.lane.b32.xlu1 %v2873_v11, %s2638_s23  ;;  %400 = vrot.lane.b32.xlu0 %v2884_v12, %s2639_s24 }
  0x7a   : > { %532 = vrot.lane.b32.xlu0 %v2866_v10, %s2640_s25  ;;  %398 = vrot.lane.b32.xlu1 %v2891_v13, %s2639_s24 }
  0x7e   : > { %464 = vrot.lane.b32.xlu0 %v2884_v12, %s2638_s23  ;;  %530 = vrot.lane.b32.xlu1 %v2873_v11, %s2640_s25 }
  0x82   : > { %462 = vrot.lane.b32.xlu1 %v2891_v13, %s2638_s23  ;;  %396 = vrot.lane.b32.xlu0 %v2902_v14, %s2639_s24 }
  0x86   : > { %528 = vrot.lane.b32.xlu0 %v2884_v12, %s2640_s25  ;;  %394 = vrot.lane.b32.xlu1 %v2909_v15, %s2639_s24 }
  0x8a   : > { %460 = vrot.lane.b32.xlu0 %v2902_v14, %s2638_s23  ;;  %526 = vrot.lane.b32.xlu1 %v2891_v13, %s2640_s25 }
  0x8e   : > { %458 = vrot.lane.b32.xlu1 %v2909_v15, %s2638_s23  ;;  %392 = vrot.lane.b32.xlu0 %v2920_v16, %s2639_s24  ;;  %s343_s24 = sand.u32 1, %s2623_s28  }
  0x8f   : > { %s3534_s9 = scalar_lea.sflag [#allocation4], %s343_s24 }
  0x92   : > { %603 = vperm.xlu1 %2343, %v584_v17   ;;  %524 = vrot.lane.b32.xlu0 %v2902_v14, %s2640_s25 }
  0x96   : > { %522 = vrot.lane.b32.xlu1 %v2909_v15, %s2640_s25  ;;  %456 = vrot.lane.b32.xlu0 %v2920_v16, %s2638_s23 }
  0x9a   : > { %520 = vrot.lane.b32.xlu1 %v2920_v16, %s2640_s25  ;;  %606 = vperm.xlu0 %2344, %v585_v18   ;;  %s2035_s25 = sshll.u32 %s343_s24, 7 }
  0x9b   : > { %s3505_s26 = scalar_lea.vmem [#allocation7], %s2035_s25 }
  0x9c   : > { %s1931_s12 = sshll.u32 %s3505_s26, 4  ;;  %s3528_s12 = int_to_ptr.vmem [resolvable:$true] %s1931_s12 }
  0x9d   : > { %s2563_s17 = scalar_lea.vmem %s3528_s12, 2048  ;;  %p2570_p11 = scmp.lt.s32.totalorder %s3528_s12, %s2568_s21 }
  0x9e   : > { %609 = vperm.xlu1 %2343, %v586_v19   ;;  %612 = vperm.xlu0 %2344, %v587_v20   ;;  %p2564_p10 = scmp.ne.s32.totalorder %s3528_s12, %s2563_s17  ;;  %p2571_p0 = scmp.lt.s32.totalorder %s2569_s22, %s2563_s17 }
  0xa0   : > { %p2565_p12 = pnand %p2564_p10, %p2728_p5  ;;  %p2572_p1 = por %p2571_p0, %p2570_p11 }
  0xa2   : > { %615 = vperm.xlu1 %2343, %v588_v21   ;;  %618 = vperm.xlu0 %2344, %v589_v22   ;;  %p2566_p8 = pneg %p2565_p12 }
  0xa4   : > { %p2573_p3 = pnand %p2572_p1, %p2566_p8 }
  0xa6   : > { %621 = vperm.xlu1 %2343, %v590_v23   ;;  %624 = vperm.xlu0 %2344, %v591_v24  }
  0xaa   : > { %627 = vperm.xlu1 %2343, %v592_v25   ;;  %630 = vperm.xlu0 %2344, %v593_v26  }
  0xac   : > { %v487_v29 = vpop.permute.xlu1 %486  ;;  %v423_v30 = vpop.permute.xlu0 %422 }
  0xad   : > { %v455_v31 = vmax.f32 %v2791_v1, %v423_v30 }
  0xae   : > { %633 = vperm.xlu1 %2343, %v594_v27   ;;  %636 = vperm.xlu0 %2344, %v595_v28  }
  0xaf   : > { %v519_v38 = vmax.f32 %v455_v31, %v487_v29 }
  0xb0   : > { %v421_v34 = vpop.permute.xlu0 %420  ;;  %v419_v35 = vpop.permute.xlu1 %418 }
  0xb1   : > { %v454_v42 = vmax.f32 %v2798_v2, %v421_v34  ;;  %v453_v48 = vmax.f32 %v2801_v3, %v419_v35 }
  0xb2   : > { %639 = vperm.xlu1 %2343, %v596_v32   ;;  %642 = vperm.xlu0 %2344, %v597_v33  }
  0xb4   : > { %v485_v39 = vpop.permute.xlu0 %484  ;;  %v551_v40 = vpop.permute.xlu1 %550 }
  0xb5   : > { %v583_v41 = vmax.f32 %v519_v38, %v551_v40  ;;  %v518_v45 = vmax.f32 %v454_v42, %v485_v39 }
  0xb6   : > { %645 = vperm.xlu1 %2343, %v598_v36   ;;  %648 = vperm.xlu0 %2344, %v599_v37  }
  0xb7   : > { %2174 = vmatprep.subr.mxu0 %v583_v41 }
  0xb8   : > { %2175 = vmatpush3.msra.mxu0 %v583_v41  ;;  %v483_v43 = vpop.permute.xlu1 %482  ;;  %v417_v44 = vpop.permute.xlu0 %416 }
  0xb9   : > { %v517_v50 = vmax.f32 %v453_v48, %v483_v43  ;;  %v452_v56 = vmax.f32 %v2812_v4, %v417_v44 }
  0xbc   : > { %v549_v46 = vpop.permute.xlu0 %548  ;;  %v415_v47 = vpop.permute.xlu1 %414 }
  0xbd   : > { %v582_v49 = vmax.f32 %v518_v45, %v549_v46  ;;  %v451_v60 = vmax.f32 %v2819_v5, %v415_v47 }
  0xbf   : > { %2176 = vmatprep.subr.mxu0 %v582_v49 }
  0xc0   : > { %2177 = vmatpush3.msra.mxu0 %v582_v49  ;;  %v481_v51 = vpop.permute.xlu0 %480  ;;  %v547_v52 = vpop.permute.xlu1 %546 }
  0xc1   : > { %v581_v53 = vmax.f32 %v517_v50, %v547_v52  ;;  %v516_v57 = vmax.f32 %v452_v56, %v481_v51 }
  0xc3   : > { %2178 = vmatprep.subr.mxu0 %v581_v53 }
  0xc4   : > { %2179 = vmatpush3.msra.mxu0 %v581_v53  ;;  %v479_v54 = vpop.permute.xlu1 %478  ;;  %v413_v55 = vpop.permute.xlu0 %412 }
  0xc5   : > { %v515_v62 = vmax.f32 %v451_v60, %v479_v54  ;;  %v450_v17 = vmax.f32 %v2830_v6, %v413_v55 }
  0xc8   : > { %v545_v58 = vpop.permute.xlu0 %544  ;;  %v411_v59 = vpop.permute.xlu1 %410 }
  0xc9   : > { %v580_v61 = vmax.f32 %v516_v57, %v545_v58  ;;  %v449_v20 = vmax.f32 %v2837_v7, %v411_v59  ;;  %v600_v59 = vlaneseq }
  0xcb   : > { %2180 = vmatprep.subr.mxu0 %v580_v61 }
  0xcc   : > { %2181 = vmatpush3.msra.mxu0 %v580_v61  ;;  %v477_v63 = vpop.permute.xlu0 %476  ;;  %v543_v0 = vpop.permute.xlu1 %542 }
  0xcd   : > { %v579_v1 = vmax.f32 %v515_v62, %v543_v0  ;;  %v514_v18 = vmax.f32 %v450_v17, %v477_v63  ;;  %v2641_v63 = vmov 1.0  }
  0xcf   : > { %2182 = vmatprep.subr.mxu0 %v579_v1 }
  0xd0   : > { %2183 = vmatpush3.msra.mxu0 %v579_v1  ;;  %v475_v2 = vpop.permute.xlu1 %474  ;;  %v409_v3 = vpop.permute.xlu0 %408 }
  0xd1   : > { %v513_v5 = vmax.f32 %v449_v20, %v475_v2  ;;  %v448_v27 = vmax.f32 %v2848_v8, %v409_v3 }
  0xd4   : > { %v541_v4 = vpop.permute.xlu0 %540  ;;  %v407_v19 = vpop.permute.xlu1 %406 }
  0xd5   : > { %v578_v21 = vmax.f32 %v514_v18, %v541_v4  ;;  %v447_v30 = vmax.f32 %v2855_v9, %v407_v19 }
  0xd7   : > { %2184 = vmatprep.subr.mxu0 %v578_v21 }
  0xd8   : > { %2185 = vmatpush3.msra.mxu0 %v578_v21  ;;  %v473_v22 = vpop.permute.xlu0 %472  ;;  %v539_v23 = vpop.permute.xlu1 %538 }
  0xd9   : > { %v577_v24 = vmax.f32 %v513_v5, %v539_v23  ;;  %v512_v28 = vmax.f32 %v448_v27, %v473_v22 }
  0xdb   : > { %2186 = vmatprep.subr.mxu0 %v577_v24 }
  0xdc   : > { %2187 = vmatpush3.msra.mxu0 %v577_v24  ;;  %v471_v25 = vpop.permute.xlu1 %470  ;;  %v405_v26 = vpop.permute.xlu0 %404 }
  0xdd   : > { %v511_v7 = vmax.f32 %v447_v30, %v471_v25  ;;  %v446_v37 = vmax.f32 %v2866_v10, %v405_v26 }
  0xe0   : > { %v537_v6 = vpop.permute.xlu0 %536  ;;  %v403_v29 = vpop.permute.xlu1 %402 }
  0xe1   : > { %v576_v31 = vmax.f32 %v512_v28, %v537_v6  ;;  %v445_v40 = vmax.f32 %v2873_v11, %v403_v29 }
  0xe3   : > { %2188 = vmatprep.subr.mxu0 %v576_v31 }
  0xe4   : > { %2189 = vmatpush3.msra.mxu0 %v576_v31  ;;  %v469_v32 = vpop.permute.xlu0 %468  ;;  %v535_v33 = vpop.permute.xlu1 %534 }
  0xe5   : > { %v575_v34 = vmax.f32 %v511_v7, %v535_v33  ;;  %v510_v38 = vmax.f32 %v446_v37, %v469_v32 }
  0xe7   : > { %2190 = vmatprep.subr.mxu0 %v575_v34 }
  0xe8   : > { %2191 = vmatpush3.msra.mxu0 %v575_v34  ;;  %v467_v35 = vpop.permute.xlu1 %466  ;;  %v401_v36 = vpop.permute.xlu0 %400 }
  0xe9   : > { %v509_v9 = vmax.f32 %v445_v40, %v467_v35  ;;  %v444_v47 = vmax.f32 %v2884_v12, %v401_v36 }
  0xec   : > { %v533_v8 = vpop.permute.xlu0 %532  ;;  %v399_v39 = vpop.permute.xlu1 %398 }
  0xed   : > { %v574_v41 = vmax.f32 %v510_v38, %v533_v8  ;;  %v443_v50 = vmax.f32 %v2891_v13, %v399_v39  ;;  %v2971_v13 = vand.u32 127, %v600_v59 }
  0xef   : > { %2192 = vmatprep.subr.mxu0 %v574_v41 }
  0xf0   : > { %2193 = vmatpush3.msra.mxu0 %v574_v41  ;;  %v465_v42 = vpop.permute.xlu0 %464  ;;  %v531_v43 = vpop.permute.xlu1 %530 }
  0xf1   : > { %v573_v44 = vmax.f32 %v509_v9, %v531_v43  ;;  %v508_v48 = vmax.f32 %v444_v47, %v465_v42 }
  0xf3   : > { %2194 = vmatprep.subr.mxu0 %v573_v44 }
  0xf4   : > { %2195 = vmatpush3.msra.mxu0 %v573_v44  ;;  %v463_v45 = vpop.permute.xlu1 %462  ;;  %v397_v46 = vpop.permute.xlu0 %396 }
  0xf5   : > { %v507_v11 = vmax.f32 %v443_v50, %v463_v45  ;;  %v442_v56 = vmax.f32 %v2902_v14, %v397_v46 }
  0xf8   : > { %v529_v10 = vpop.permute.xlu0 %528  ;;  %v395_v49 = vpop.permute.xlu1 %394 }
  0xf9   : > { %v572_v51 = vmax.f32 %v508_v48, %v529_v10  ;;  %v441_v62 = vmax.f32 %v2909_v15, %v395_v49 }
  0xfb   : > { %2196 = vmatprep.subr.mxu0 %v572_v51 }
  0xfc   : > { %2197 = vmatpush3.msra.mxu0 %v572_v51  ;;  %v461_v52 = vpop.permute.xlu0 %460  ;;  %v527_v53 = vpop.permute.xlu1 %526 }
  0xfd   : > { %v571_v54 = vmax.f32 %v507_v11, %v527_v53  ;;  %v506_v57 = vmax.f32 %v442_v56, %v461_v52 }
  0xff   : > { %2198 = vmatprep.subr.mxu0 %v571_v54 }
 0x100   : > { %2199 = vmatpush3.msra.mxu0 %v571_v54  ;;  %v393_v55 = vpop.permute.xlu0 %392  ;;  %v459_v60 = vpop.permute.xlu1 %458 }
 0x101   : > { %v505_v0 = vmax.f32 %v441_v62, %v459_v60  ;;  %v440_v14 = vmax.f32 %v2920_v16, %v393_v55 }
 0x104   : > { %v525_v58 = vpop.permute.xlu0 %524 }
 0x105   : > { %v570_v12 = vmax.f32 %v506_v57, %v525_v58 }
 0x107   : > { %2200 = vmatprep.subr.mxu0 %v570_v12 }
 0x108   : > { %2201 = vmatpush3.msra.mxu0 %v570_v12  ;;  %v457_v1 = vpop.permute.xlu0 %456 }
 0x109   : > { %v504_v17 = vmax.f32 %v440_v14, %v457_v1 }
 0x10d   : > { %v604_v61 = vpop.permute.xlu1 %603 }
 0x10e   : > { %vm650_vm0 = vcmp.eq.s32.totalorder %v2971_v13, %v604_v61 }
 0x10f   : > { %2206 = vmatprep.mubr.msk.f32.mxu0 %vm650_vm0, %v2641_v63  ;;  %vm843_vm0 = vcmask 261120  }
 0x111   : > { %v523_v2 = vpop.permute.xlu1 %522 }
 0x112   : > { %v569_v3 = vmax.f32 %v505_v0, %v523_v2 }
 0x114   : > { %2202 = vmatprep.subr.mxu0 %v569_v3 }
 0x115   : > { %v521_v18 = vpop.permute.xlu1 %520  ;;  %2203 = vmatpush3.msra.mxu0 %v569_v3  ;;  %v607_v4 = vpop.permute.xlu0 %606 }
 0x116   : > { %v568_v19 = vmax.f32 %v504_v17, %v521_v18  ;;  %vm651_vm1 = vcmp.eq.s32.totalorder %v2971_v13, %v607_v4 }
 0x118   : > { %2204 = vmatprep.subr.mxu0 %v568_v19 }
 0x119   : > { %v610_v15 = vpop.permute.xlu1 %609  ;;  %2205 = vmatpush3.msra.mxu0 %v568_v19  ;;  %v613_v20 = vpop.permute.xlu0 %612 }
 0x11a   : > { %vm652_vm2 = vcmp.eq.s32.totalorder %v2971_v13, %v610_v15  ;;  %2207 = vmatmul.mubr.msk.f32.vlgmr.msra.gmra.mxu0 %vm651_vm1, %v2641_v63  ;;  %vm653_vm3 = vcmp.eq.s32.totalorder %v2971_v13, %v613_v20  ;;  %vm1244_vm1 = vcmask 523264  }
 0x11b   : > { %2209 = vmatprep.mubr.msk.f32.mxu0 %vm652_vm2, %v2641_v63 }
 0x11d   : > { %v616_v16 = vpop.permute.xlu1 %615  ;;  %v619_v21 = vpop.permute.xlu0 %618 }
 0x11e   : > { %vm654_vm4 = vcmp.eq.s32.totalorder %v2971_v13, %v616_v16  ;;  %2210 = vmatmul.mubr.msk.f32.gmra.mxu0 %vm653_vm3, %v2641_v63  ;;  %vm655_vm5 = vcmp.eq.s32.totalorder %v2971_v13, %v619_v21 }
 0x11f   : > { %2212 = vmatprep.mubr.msk.f32.mxu0 %vm654_vm4, %v2641_v63 }
 0x121   : > { %v622_v5 = vpop.permute.xlu1 %621  ;;  %v625_v22 = vpop.permute.xlu0 %624 }
 0x122   : > { %vm656_vm6 = vcmp.eq.s32.totalorder %v2971_v13, %v622_v5  ;;  %2213 = vmatmul.mubr.msk.f32.gmra.mxu0 %vm655_vm5, %v2641_v63  ;;  %vm657_vm7 = vcmp.eq.s32.totalorder %v2971_v13, %v625_v22 }
 0x123   : > { %2215 = vmatprep.mubr.msk.f32.mxu0 %vm656_vm6, %v2641_v63 }
 0x125   : > { %v628_v23 = vpop.permute.xlu1 %627  ;;  %v631_v24 = vpop.permute.xlu0 %630 }
 0x126   : > { %vm658_vm8 = vcmp.eq.s32.totalorder %v2971_v13, %v628_v23  ;;  %2216 = vmatmul.mubr.msk.f32.gmra.mxu0 %vm657_vm7, %v2641_v63  ;;  %vm659_vm9 = vcmp.eq.s32.totalorder %v2971_v13, %v631_v24 }
 0x127   : > { %2218 = vmatprep.mubr.msk.f32.mxu0 %vm658_vm8, %v2641_v63 }
 0x129   : > { %v634_v25 = vpop.permute.xlu1 %633  ;;  %v637_v26 = vpop.permute.xlu0 %636 }
 0x12a   : > { %vm660_vm10 = vcmp.eq.s32.totalorder %v2971_v13, %v634_v25  ;;  %2219 = vmatmul.mubr.msk.f32.gmra.mxu0 %vm659_vm9, %v2641_v63  ;;  %vm661_vm11 = vcmp.eq.s32.totalorder %v2971_v13, %v637_v26 }
 0x12b   : > { %2221 = vmatprep.mubr.msk.f32.mxu0 %vm660_vm10, %v2641_v63 }
 0x12d   : > { %v640_v27 = vpop.permute.xlu1 %639  ;;  %v643_v28 = vpop.permute.xlu0 %642 }
 0x12e   : > { %vm662_vm12 = vcmp.eq.s32.totalorder %v2971_v13, %v640_v27  ;;  %2222 = vmatmul.mubr.msk.f32.gmra.mxu0 %vm661_vm11, %v2641_v63  ;;  %vm663_vm13 = vcmp.eq.s32.totalorder %v2971_v13, %v643_v28 }
 0x12f   : > { %2224 = vmatprep.mubr.msk.f32.mxu0 %vm662_vm12, %v2641_v63 }
 0x131   : > { %v646_v6 = vpop.permute.xlu1 %645  ;;  %v649_v29 = vpop.permute.xlu0 %648 }
 0x132   : > { %vm664_vm14 = vcmp.eq.s32.totalorder %v2971_v13, %v646_v6  ;;  %2225 = vmatmul.mubr.msk.f32.gmra.mxu0 %vm663_vm13, %v2641_v63  ;;  %vm665_vm15 = vcmp.eq.s32.totalorder %v2971_v13, %v649_v29 }
 0x133   : > { %2227 = vmatprep.mubr.msk.f32.mxu0 %vm664_vm14, %v2641_v63 }
 0x136   : > { %2228 = vmatmul.mubr.msk.f32.gmra.mxu0 %vm665_vm15, %v2641_v63 }
 0x1da   : > { %v2208_v30 = vpop.f32.mrf.mxu0 }
 0x1db   : > { %v847_v31 = vsel %vm843_vm0, %v2208_v30, 0.0 }
 0x1dc   : > { %848 = vadd.xlane.f32.xlu0 %v847_v31  ;;  %v764_v7 = vpop.f32.mrf.mxu0 }
 0x1dd   : > { %v844_v32 = vsel %vm843_vm0, %v764_v7, 0.0 }
 0x1de   : > { %845 = vadd.xlane.f32.xlu1 %v844_v32  ;;  %v2211_v33 = vpop.f32.mrf.mxu0 }
 0x1df   : > { %v853_v35 = vsel %vm843_vm0, %v2211_v33, 0.0 }
 0x1e0   : > { %v774_v34 = vpop.f32.mrf.mxu0 }
 0x1e1   : > { %v850_v36 = vsel %vm843_vm0, %v774_v34, 0.0 }
 0x1e2   : > { %854 = vadd.xlane.f32.xlu1 %v853_v35  ;;  %851 = vadd.xlane.f32.xlu0 %v850_v36  ;;  %v2214_v37 = vpop.f32.mrf.mxu0 }
 0x1e3   : > { %v859_v8 = vsel %vm843_vm0, %v2214_v37, 0.0 }
 0x1e4   : > { %v784_v38 = vpop.f32.mrf.mxu0 }
 0x1e5   : > { %v856_v39 = vsel %vm843_vm0, %v784_v38, 0.0 }
 0x1e6   : > { %860 = vadd.xlane.f32.xlu1 %v859_v8  ;;  %857 = vadd.xlane.f32.xlu0 %v856_v39  ;;  %v2997_v40 = vpop.f32.mrf.mxu0 }
 0x1e7   : > { %v865_v9 = vsel %vm843_vm0, %v2997_v40, 0.0 }
 0x1e8   : > { %v2999_v41 = vpop.f32.mrf.mxu0 }
 0x1e9   : > { %v862_v42 = vsel %vm843_vm0, %v2999_v41, 0.0 }
 0x1ea   : > { %866 = vadd.xlane.f32.xlu1 %v865_v9  ;;  %863 = vadd.xlane.f32.xlu0 %v862_v42  ;;  %v3005_v43 = vpop.f32.mrf.mxu0 }
 0x1eb   : > { %v871_v45 = vsel %vm843_vm0, %v3005_v43, 0.0 }
 0x1ec   : > { %v3007_v44 = vpop.f32.mrf.mxu0 }
 0x1ed   : > { %v868_v46 = vsel %vm843_vm0, %v3007_v44, 0.0 }
 0x1ee   : > { %872 = vadd.xlane.f32.xlu1 %v871_v45  ;;  %869 = vadd.xlane.f32.xlu0 %v868_v46  ;;  %v3013_v47 = vpop.f32.mrf.mxu0 }
 0x1ef   : > { %v877_v10 = vsel %vm843_vm0, %v3013_v47, 0.0 }
 0x1f0   : > { %v3015_v48 = vpop.f32.mrf.mxu0 }
 0x1f1   : > { %v874_v49 = vsel %vm843_vm0, %v3015_v48, 0.0 }
 0x1f2   : > { %878 = vadd.xlane.f32.xlu1 %v877_v10  ;;  %875 = vadd.xlane.f32.xlu0 %v874_v49  ;;  %v3021_v50 = vpop.f32.mrf.mxu0 }
 0x1f3   : > { %v883_v11 = vsel %vm843_vm0, %v3021_v50, 0.0 }
 0x1f4   : > { %v3023_v51 = vpop.f32.mrf.mxu0 }
 0x1f5   : > { %v880_v52 = vsel %vm843_vm0, %v3023_v51, 0.0 }
 0x1f6   : > { %884 = vadd.xlane.f32.xlu1 %v883_v11  ;;  %881 = vadd.xlane.f32.xlu0 %v880_v52  ;;  %v3029_v53 = vpop.f32.mrf.mxu0 }
 0x1f7   : > { %v889_v55 = vsel %vm843_vm0, %v3029_v53, 0.0 }
 0x1f8   : > { %v3031_v54 = vpop.f32.mrf.mxu0 }
 0x1f9   : > { %v886_v56 = vsel %vm843_vm0, %v3031_v54, 0.0 }
 0x1fa   : > { %890 = vadd.xlane.f32.xlu1 %v889_v55  ;;  %887 = vadd.xlane.f32.xlu0 %v886_v56 }
 0x265   : > { %v849_v57 = vpop.xlane.xlu0 %848 }
 0x266   : > { %v894_v58 = vmul.f32 0.03125, %v849_v57 }
 0x267   : > { %v846_v12 = vpop.xlane.xlu1 %845 }
 0x268   : > { %v3037_v59 = vsub.f32 %v2208_v30, %v894_v58  ;;  %v893_v60 = vmul.f32 0.03125, %v846_v12 }
 0x26a   : > { %v3039_v13 = vsub.f32 %v764_v7, %v893_v60  ;;  %v926_v61 = vmul.f32 %v3037_v59, %v3037_v59 }
 0x26b   : > { %v855_v62 = vpop.xlane.xlu1 %854  ;;  %v852_v63 = vpop.xlane.xlu0 %851 }
 0x26c   : > { %v896_v0 = vmul.f32 0.03125, %v855_v62  ;;  %v895_v1 = vmul.f32 0.03125, %v852_v63  ;;  %v944_v2 = vsel %vm843_vm0, %v926_v61, 0.0  ;;  %v925_v14 = vmul.f32 %v3039_v13, %v3039_v13 }
 0x26d   : > { %945 = vadd.xlane.f32.xlu1 %v944_v2 }
 0x26e   : > { %v3046_v3 = vsub.f32 %v2211_v33, %v896_v0  ;;  %v3048_v17 = vsub.f32 %v774_v34, %v895_v1  ;;  %v941_v18 = vsel %vm843_vm0, %v925_v14, 0.0 }
 0x26f   : > { %v861_v4 = vpop.xlane.xlu1 %860  ;;  %942 = vadd.xlane.f32.xlu0 %v941_v18  ;;  %v858_v19 = vpop.xlane.xlu0 %857 }
 0x270   : > { %v898_v15 = vmul.f32 0.03125, %v861_v4  ;;  %v897_v20 = vmul.f32 0.03125, %v858_v19  ;;  %v928_v16 = vmul.f32 %v3046_v3, %v3046_v3  ;;  %v927_v21 = vmul.f32 %v3048_v17, %v3048_v17 }
 0x272   : > { %v3055_v5 = vsub.f32 %v2214_v37, %v898_v15  ;;  %v3057_v22 = vsub.f32 %v784_v38, %v897_v20  ;;  %v950_v23 = vsel %vm843_vm0, %v928_v16, 0.0  ;;  %v947_v24 = vsel %vm843_vm0, %v927_v21, 0.0  ;;  %v2346_v21 = vld [vmem:[#allocation2] sm:$0xff]  }
 0x273   : > { %v867_v25 = vpop.xlane.xlu1 %866  ;;  %951 = vadd.xlane.f32.xlu1 %v950_v23  ;;  %948 = vadd.xlane.f32.xlu0 %v947_v24  ;;  %v864_v26 = vpop.xlane.xlu0 %863 }
 0x274   : > { %v900_v27 = vmul.f32 0.03125, %v867_v25  ;;  %v899_v28 = vmul.f32 0.03125, %v864_v26  ;;  %v930_v6 = vmul.f32 %v3055_v5, %v3055_v5  ;;  %v929_v29 = vmul.f32 %v3057_v22, %v3057_v22 }
 0x276   : > { %v3066_v30 = vsub.f32 %v2997_v40, %v900_v27  ;;  %v3069_v31 = vsub.f32 %v2999_v41, %v899_v28  ;;  %v956_v7 = vsel %vm843_vm0, %v930_v6, 0.0  ;;  %v953_v32 = vsel %vm843_vm0, %v929_v29, 0.0 }
 0x277   : > { %v873_v33 = vpop.xlane.xlu1 %872  ;;  %957 = vadd.xlane.f32.xlu1 %v956_v7  ;;  %954 = vadd.xlane.f32.xlu0 %v953_v32  ;;  %v870_v34 = vpop.xlane.xlu0 %869 }
 0x278   : > { %v902_v35 = vmul.f32 0.03125, %v873_v33  ;;  %v901_v36 = vmul.f32 0.03125, %v870_v34  ;;  %v932_v37 = vmul.f32 %v3066_v30, %v3066_v30  ;;  %v931_v38 = vmul.f32 %v3069_v31, %v3069_v31 }
 0x27a   : > { %v3078_v8 = vsub.f32 %v3005_v43, %v902_v35  ;;  %v3081_v39 = vsub.f32 %v3007_v44, %v901_v36  ;;  %v962_v40 = vsel %vm843_vm0, %v932_v37, 0.0  ;;  %v959_v41 = vsel %vm843_vm0, %v931_v38, 0.0 }
 0x27b   : > { %v879_v9 = vpop.xlane.xlu1 %878  ;;  %963 = vadd.xlane.f32.xlu1 %v962_v40  ;;  %960 = vadd.xlane.f32.xlu0 %v959_v41  ;;  %v876_v42 = vpop.xlane.xlu0 %875 }
 0x27c   : > { %v904_v45 = vmul.f32 0.03125, %v879_v9  ;;  %v903_v46 = vmul.f32 0.03125, %v876_v42  ;;  %v934_v10 = vmul.f32 %v3078_v8, %v3078_v8  ;;  %v933_v43 = vmul.f32 %v3081_v39, %v3081_v39 }
 0x27e   : > { %v3090_v49 = vsub.f32 %v3013_v47, %v904_v45  ;;  %v3093_v44 = vsub.f32 %v3015_v48, %v903_v46  ;;  %v968_v11 = vsel %vm843_vm0, %v934_v10, 0.0  ;;  %v965_v52 = vsel %vm843_vm0, %v933_v43, 0.0 }
 0x27f   : > { %v885_v55 = vpop.xlane.xlu1 %884  ;;  %969 = vadd.xlane.f32.xlu1 %v968_v11  ;;  %966 = vadd.xlane.f32.xlu0 %v965_v52  ;;  %v882_v56 = vpop.xlane.xlu0 %881 }
 0x280   : > { %v906_v57 = vmul.f32 0.03125, %v885_v55  ;;  %v905_v58 = vmul.f32 0.03125, %v882_v56  ;;  %v936_v12 = vmul.f32 %v3090_v49, %v3090_v49  ;;  %v935_v47 = vmul.f32 %v3093_v44, %v3093_v44  ;;  %v3130_v56 = vld [vmem:[%s3576_s2] ss:$0 sm:$0xff] }
 0x282   : > { %v3102_v60 = vsub.f32 %v3021_v50, %v906_v57  ;;  %v3105_v48 = vsub.f32 %v3023_v51, %v905_v58  ;;  %v974_v61 = vsel %vm843_vm0, %v936_v12, 0.0  ;;  %v971_v62 = vsel %vm843_vm0, %v935_v47, 0.0 }
 0x283   : > { %v891_v63 = vpop.xlane.xlu1 %890  ;;  %975 = vadd.xlane.f32.xlu1 %v974_v61  ;;  %972 = vadd.xlane.f32.xlu0 %v971_v62  ;;  %v888_v0 = vpop.xlane.xlu0 %887 }
 0x284   : > { %v908_v1 = vmul.f32 0.03125, %v891_v63  ;;  %v907_v2 = vmul.f32 0.03125, %v888_v0  ;;  %v938_v14 = vmul.f32 %v3102_v60, %v3102_v60  ;;  %v937_v50 = vmul.f32 %v3105_v48, %v3105_v48 }
 0x286   : > { %v3114_v18 = vsub.f32 %v3029_v53, %v908_v1  ;;  %v3117_v51 = vsub.f32 %v3031_v54, %v907_v2  ;;  %v980_v4 = vsel %vm843_vm0, %v938_v14, 0.0  ;;  %v977_v19 = vsel %vm843_vm0, %v937_v50, 0.0  ;;  %v2345_v54 = vld [vmem:[#allocation2 + $0x8] sm:$0xff]   ;;  %v3138_v1 = vld [vmem:[%s3577_s3] ss:$0 sm:$0xff] }
 0x287   : > { %981 = vadd.xlane.f32.xlu1 %v980_v4  ;;  %978 = vadd.xlane.f32.xlu0 %v977_v19 }
 0x288   : > { %v940_v15 = vmul.f32 %v3114_v18, %v3114_v18  ;;  %v939_v20 = vmul.f32 %v3117_v51, %v3117_v51  ;;  %2230 = vmatprep.subr.bf16.mxu1 %v2345_v54 }
 0x289   : > { %2231 = vmatpush3.bf16.msra.mxu1 %v2345_v54 }
 0x28a   : > { %v986_v16 = vsel %vm843_vm0, %v940_v15, 0.0  ;;  %v983_v53 = vsel %vm843_vm0, %v939_v20, 0.0  ;;  %2232 = vmatprep.subr.bf16.mxu1 %v2346_v21 }
 0x28b   : > { %987 = vadd.xlane.f32.xlu1 %v986_v16  ;;  %984 = vadd.xlane.f32.xlu0 %v983_v53 }
 0x28d   : > { %2233 = vmatpush3.bf16.msra.mxu1 %v2346_v21 }
 0x2f6   : > { %v946_v23 = vpop.xlane.xlu1 %945 }
 0x2f7   : > { %v990_v24 = vmul.f32 0.03125, %v946_v23 }
 0x2f8   : > { %v943_v25 = vpop.xlane.xlu0 %942 }
 0x2f9   : > { %v1006_v26 = vadd.f32 1e-08, %v990_v24  ;;  %v989_v27 = vmul.f32 0.03125, %v943_v25 }
 0x2fb   : > { %2351 = vrsqrt.f32 %v1006_v26  ;;  %v1005_v28 = vadd.f32 1e-08, %v989_v27 }
 0x2fc   : > { %v952_v6 = vpop.xlane.xlu1 %951  ;;  %v949_v29 = vpop.xlane.xlu0 %948 }
 0x2fd   : > { %2353 = vrsqrt.f32 %v1005_v28  ;;  %v992_v7 = vmul.f32 0.03125, %v952_v6  ;;  %v991_v32 = vmul.f32 0.03125, %v949_v29 }
 0x2ff   : > { %v1008_v33 = vadd.f32 1e-08, %v992_v7  ;;  %v1007_v34 = vadd.f32 1e-08, %v991_v32 }
 0x300   : > { %v958_v35 = vpop.xlane.xlu1 %957  ;;  %v955_v36 = vpop.xlane.xlu0 %954 }
 0x301   : > { %2355 = vrsqrt.f32 %v1008_v33  ;;  %v994_v37 = vmul.f32 0.03125, %v958_v35  ;;  %v993_v38 = vmul.f32 0.03125, %v955_v36 }
 0x302   : > { %2357 = vrsqrt.f32 %v1007_v34 }
 0x303   : > { %v1010_v40 = vadd.f32 1e-08, %v994_v37  ;;  %v1009_v41 = vadd.f32 1e-08, %v993_v38 }
 0x304   : > { %v964_v9 = vpop.xlane.xlu1 %963  ;;  %v961_v42 = vpop.xlane.xlu0 %960 }
 0x305   : > { %2359 = vrsqrt.f32 %v1010_v40  ;;  %v996_v45 = vmul.f32 0.03125, %v964_v9  ;;  %v995_v46 = vmul.f32 0.03125, %v961_v42 }
 0x306   : > { %2361 = vrsqrt.f32 %v1009_v41 }
 0x307   : > { %v1012_v10 = vadd.f32 1e-08, %v996_v45  ;;  %v1011_v43 = vadd.f32 1e-08, %v995_v46 }
 0x308   : > { %v2352_v11 = vpop.eup %2351  ;;  %v970_v52 = vpop.xlane.xlu1 %969 }
 0x309   : > { %v967_v55 = vpop.xlane.xlu0 %966  ;;  %2363 = vrsqrt.f32 %v1012_v10  ;;  %v998_v57 = vmul.f32 0.03125, %v970_v52  ;;  %v1038_v12 = vmul.f32 %v2352_v11, %v3037_v59 }
 0x30a   : > { %v997_v58 = vmul.f32 0.03125, %v967_v55  ;;  %v2354_v47 = vpop.eup %2353  ;;  %2365 = vrsqrt.f32 %v1011_v43 }
 0x30b   : > { %v1014_v61 = vadd.f32 1e-08, %v998_v57  ;;  %v1037_v63 = vmul.f32 %v2354_v47, %v3039_v13  ;;  %v1061_v0 = vmul.f32 %v3130_v56, %v1038_v12 }
 0x30c   : > { %v1013_v62 = vadd.f32 1e-08, %v997_v58  ;;  %v976_v2 = vpop.xlane.xlu1 %975 }
 0x30d   : > { %v973_v14 = vpop.xlane.xlu0 %972  ;;  %2367 = vrsqrt.f32 %v1014_v61  ;;  %v1000_v50 = vmul.f32 0.03125, %v976_v2  ;;  %v1060_v59 = vmul.f32 %v3130_v56, %v1037_v63  ;;  %v1084_v15 = vadd.f32 %v3138_v1, %v1061_v0 }
 0x30e   : > { %v999_v4 = vmul.f32 0.03125, %v973_v14  ;;  %v2356_v19 = vpop.eup %2355  ;;  %2369 = vrsqrt.f32 %v1013_v62 }
 0x30f   : > { %v2358_v20 = vpop.eup %2357  ;;  %v1016_v13 = vadd.f32 1e-08, %v1000_v50  ;;  %v1083_v53 = vadd.f32 %v3138_v1, %v1060_v59  ;;  %v1040_v54 = vmul.f32 %v2356_v19, %v3046_v3 }
 0x310   : > { %v1015_v16 = vadd.f32 1e-08, %v999_v4  ;;  %v982_v21 = vpop.xlane.xlu1 %981  ;;  %v1039_v24 = vmul.f32 %v2358_v20, %v3048_v17 }
 0x311   : > { %v979_v23 = vpop.xlane.xlu0 %978  ;;  %2371 = vrsqrt.f32 %v1016_v13  ;;  %v1002_v25 = vmul.f32 0.03125, %v982_v21  ;;  %v1099_v27 = vpack.c.bf16 %v1084_v15, %v1083_v53  ;;  %v1063_v29 = vmul.f32 %v3130_v56, %v1040_v54 }
 0x312   : > { %v1001_v26 = vmul.f32 0.03125, %v979_v23  ;;  %v2360_v28 = vpop.eup %2359  ;;  %2373 = vrsqrt.f32 %v1015_v16  ;;  %v1062_v6 = vmul.f32 %v3130_v56, %v1039_v24 }
 0x313   : > { %v2362_v7 = vpop.eup %2361  ;;  %v1018_v32 = vadd.f32 1e-08, %v1002_v25  ;;  %2234 = vmatprep.mubr.msk.bf16.mxu1 %vm843_vm0, %v1099_v27  ;;  %v1042_v3 = vmul.f32 %v2360_v28, %v3055_v5  ;;  %v1086_v36 = vadd.f32 %v3138_v1, %v1063_v29 }
 0x314   : > { %v1017_v33 = vadd.f32 1e-08, %v1001_v26  ;;  %v988_v34 = vpop.xlane.xlu1 %987  ;;  %v1085_v17 = vadd.f32 %v3138_v1, %v1062_v6  ;;  %v1041_v37 = vmul.f32 %v2362_v7, %v3057_v22 }
 0x315   : > { %v985_v35 = vpop.xlane.xlu0 %984  ;;  %2375 = vrsqrt.f32 %v1018_v32  ;;  %v1004_v38 = vmul.f32 0.03125, %v988_v34  ;;  %v1065_v41 = vmul.f32 %v3130_v56, %v1042_v3 }
 0x316   : > { %v1003_v40 = vmul.f32 0.03125, %v985_v35  ;;  %v2364_v9 = vpop.eup %2363  ;;  %2377 = vrsqrt.f32 %v1017_v33  ;;  %v1100_v42 = vpack.c.bf16 %v1086_v36, %v1085_v17  ;;  %v1064_v45 = vmul.f32 %v3130_v56, %v1041_v37 }
 0x317   : > { %v2366_v46 = vpop.eup %2365  ;;  %v1020_v5 = vadd.f32 1e-08, %v1004_v38  ;;  %v1088_v43 = vadd.f32 %v3138_v1, %v1065_v41  ;;  %v1044_v11 = vmul.f32 %v2364_v9, %v3066_v30 }
 0x318   : > { %v1019_v10 = vadd.f32 1e-08, %v1003_v40  ;;  %2235 = vmatmul.mubr.msk.bf16.vlgmr.msra.gmra.mxu1 %vm843_vm0, %v1100_v42  ;;  %v1087_v22 = vadd.f32 %v3138_v1, %v1064_v45  ;;  %v1043_v52 = vmul.f32 %v2366_v46, %v3069_v31 }
 0x319   : > { %2379 = vrsqrt.f32 %v1020_v5  ;;  %v1067_v55 = vmul.f32 %v3130_v56, %v1044_v11 }
 0x31a   : > { %v2368_v57 = vpop.eup %2367  ;;  %2381 = vrsqrt.f32 %v1019_v10  ;;  %v1101_v58 = vpack.c.bf16 %v1088_v43, %v1087_v22  ;;  %v1066_v12 = vmul.f32 %v3130_v56, %v1043_v52 }
 0x31b   : > { %v2370_v47 = vpop.eup %2369  ;;  %v1090_v61 = vadd.f32 %v3138_v1, %v1067_v55  ;;  %v1046_v62 = vmul.f32 %v2368_v57, %v3078_v8 }
 0x31c   : > { %2238 = vmatprep.mubr.msk.bf16.mxu1 %vm843_vm0, %v1101_v58  ;;  %v1089_v30 = vadd.f32 %v3138_v1, %v1066_v12  ;;  %v1045_v63 = vmul.f32 %v2370_v47, %v3081_v39 }
 0x31d   : > { %v1069_v31 = vmul.f32 %v3130_v56, %v1046_v62 }
 0x31e   : > { %v2372_v0 = vpop.eup %2371  ;;  %v1102_v2 = vpack.c.bf16 %v1090_v61, %v1089_v30  ;;  %v1068_v14 = vmul.f32 %v3130_v56, %v1045_v63 }
 0x31f   : > { %v2374_v50 = vpop.eup %2373  ;;  %v1092_v4 = vadd.f32 %v3138_v1, %v1069_v31  ;;  %v1048_v59 = vmul.f32 %v2372_v0, %v3090_v49 }
 0x320   : > { %2239 = vmatmul.mubr.msk.bf16.gmra.mxu1 %vm843_vm0, %v1102_v2  ;;  %v1091_v8 = vadd.f32 %v3138_v1, %v1068_v14  ;;  %v1047_v19 = vmul.f32 %v2374_v50, %v3093_v44 }
 0x321   : > { %v1071_v15 = vmul.f32 %v3130_v56, %v1048_v59 }
 0x322   : > { %v2376_v39 = vpop.eup %2375  ;;  %v1103_v20 = vpack.c.bf16 %v1092_v4, %v1091_v8  ;;  %v1070_v13 = vmul.f32 %v3130_v56, %v1047_v19 }
 0x323   : > { %v2378_v16 = vpop.eup %2377  ;;  %v1094_v53 = vadd.f32 %v3138_v1, %v1071_v15  ;;  %v1050_v54 = vmul.f32 %v2376_v39, %v3102_v60 }
 0x324   : > { %2242 = vmatprep.mubr.msk.bf16.mxu1 %vm843_vm0, %v1103_v20  ;;  %v1093_v49 = vadd.f32 %v3138_v1, %v1070_v13  ;;  %v1049_v21 = vmul.f32 %v2378_v16, %v3105_v48 }
 0x325   : > { %v1073_v23 = vmul.f32 %v3130_v56, %v1050_v54 }
 0x326   : > { %v2380_v44 = vpop.eup %2379  ;;  %v1104_v24 = vpack.c.bf16 %v1094_v53, %v1093_v49  ;;  %v1072_v25 = vmul.f32 %v3130_v56, %v1049_v21 }
 0x327   : > { %v2382_v26 = vpop.eup %2381  ;;  %v1096_v27 = vadd.f32 %v3138_v1, %v1073_v23  ;;  %v1052_v28 = vmul.f32 %v2380_v44, %v3114_v18 }
 0x328   : > { %2243 = vmatmul.mubr.msk.bf16.gmra.mxu1 %vm843_vm0, %v1104_v24  ;;  %v1095_v60 = vadd.f32 %v3138_v1, %v1072_v25  ;;  %v1051_v6 = vmul.f32 %v2382_v26, %v3117_v51 }
 0x329   : > { %v1075_v29 = vmul.f32 %v3130_v56, %v1052_v28 }
 0x32a   : > { %v1105_v48 = vpack.c.bf16 %v1096_v27, %v1095_v60  ;;  %v1074_v7 = vmul.f32 %v3130_v56, %v1051_v6 }
 0x32b   : > { %v1098_v32 = vadd.f32 %v3138_v1, %v1075_v29 }
 0x32c   : > { %2246 = vmatprep.mubr.msk.bf16.mxu1 %vm843_vm0, %v1105_v48  ;;  %v1097_v33 = vadd.f32 %v3138_v1, %v1074_v7 }
 0x32e   : > { %v1106_v3 = vpack.c.bf16 %v1098_v32, %v1097_v33 }
 0x330   : > { %2247 = vmatmul.mubr.msk.bf16.gmra.mxu1 %vm843_vm0, %v1106_v3 }
 0x3d8   : > { %v2236_v18 = vpop.f32.mrf.mxu1 }
 0x3d9   : > { %v1251_v36 = vsel %vm1244_vm1, %v2236_v18, 0.0 }
 0x3da   : > { %v1181_v34 = vpop.f32.mrf.mxu1 }
 0x3db   : > { %v1245_v35 = vsel %vm1244_vm1, %v1181_v34, 0.0 }
 0x3dc   : > { %1246 = vadd.xlane.f32.xlu0 %v1245_v35  ;;  %v2237_v51 = vpop.f32.mrf.mxu1 }
 0x3dd   : > { %v1254_v38 = vsel %vm1244_vm1, %v2237_v51, 0.0 }
 0x3de   : > { %v1184_v17 = vpop.f32.mrf.mxu1 }
 0x3df   : > { %v1248_v56 = vsel %vm1244_vm1, %v1184_v17, 0.0 }
 0x3e0   : > { %1252 = vadd.xlane.f32.xlu0 %v1251_v36  ;;  %1249 = vadd.xlane.f32.xlu1 %v1248_v56  ;;  %v3196_v37 = vpop.f32.mrf.mxu1 }
 0x3e1   : > { %v1263_v42 = vsel %vm1244_vm1, %v3196_v37, 0.0 }
 0x3e2   : > { %v1197_v1 = vpop.f32.mrf.mxu1 }
 0x3e3   : > { %v1257_v40 = vsel %vm1244_vm1, %v1197_v1, 0.0 }
 0x3e4   : > { %1255 = vadd.xlane.f32.xlu1 %v1254_v38  ;;  %1258 = vadd.xlane.f32.xlu0 %v1257_v40  ;;  %v3200_v41 = vpop.f32.mrf.mxu1 }
 0x3e5   : > { %v1266_v10 = vsel %vm1244_vm1, %v3200_v41, 0.0 }
 0x3e6   : > { %v1200_v9 = vpop.f32.mrf.mxu1 }
 0x3e7   : > { %v1260_v45 = vsel %vm1244_vm1, %v1200_v9, 0.0 }
 0x3e8   : > { %1264 = vadd.xlane.f32.xlu0 %v1263_v42  ;;  %1261 = vadd.xlane.f32.xlu1 %v1260_v45  ;;  %v3205_v46 = vpop.f32.mrf.mxu1 }
 0x3e9   : > { %v1275_v52 = vsel %vm1244_vm1, %v3205_v46, 0.0 }
 0x3ea   : > { %v3207_v5 = vpop.f32.mrf.mxu1 }
 0x3eb   : > { %v1269_v43 = vsel %vm1244_vm1, %v3207_v5, 0.0 }
 0x3ec   : > { %1267 = vadd.xlane.f32.xlu1 %v1266_v10  ;;  %1270 = vadd.xlane.f32.xlu0 %v1269_v43  ;;  %v3213_v11 = vpop.f32.mrf.mxu1 }
 0x3ed   : > { %v1278_v12 = vsel %vm1244_vm1, %v3213_v11, 0.0 }
 0x3ee   : > { %v3215_v22 = vpop.f32.mrf.mxu1 }
 0x3ef   : > { %v1272_v55 = vsel %vm1244_vm1, %v3215_v22, 0.0 }
 0x3f0   : > { %1276 = vadd.xlane.f32.xlu0 %v1275_v52  ;;  %1273 = vadd.xlane.f32.xlu1 %v1272_v55  ;;  %v3221_v57 = vpop.f32.mrf.mxu1 }
 0x3f1   : > { %v1287_v30 = vsel %vm1244_vm1, %v3221_v57, 0.0 }
 0x3f2   : > { %v3223_v58 = vpop.f32.mrf.mxu1 }
 0x3f3   : > { %v1281_v47 = vsel %vm1244_vm1, %v3223_v58, 0.0 }
 0x3f4   : > { %1279 = vadd.xlane.f32.xlu1 %v1278_v12  ;;  %1282 = vadd.xlane.f32.xlu0 %v1281_v47  ;;  %v3229_v61 = vpop.f32.mrf.mxu1 }
 0x3f5   : > { %v1290_v31 = vsel %vm1244_vm1, %v3229_v61, 0.0 }
 0x3f6   : > { %v3231_v62 = vpop.f32.mrf.mxu1 }
 0x3f7   : > { %v1284_v63 = vsel %vm1244_vm1, %v3231_v62, 0.0 }
 0x3f8   : > { %1288 = vadd.xlane.f32.xlu0 %v1287_v30  ;;  %1285 = vadd.xlane.f32.xlu1 %v1284_v63 }
 0x3fc   : > { %1291 = vadd.xlane.f32.xlu1 %v1290_v31 }
 0x465   : > { %v1247_v0 = vpop.xlane.xlu0 %1246 }
 0x466   : > { %v1294_v2 = vmul.f32 0.015625, %v1247_v0 }
 0x468   : > { %v3239_v14 = vsub.f32 %v1181_v34, %v1294_v2 }
 0x469   : > { %v1250_v50 = vpop.xlane.xlu1 %1249  ;;  %v1253_v4 = vpop.xlane.xlu0 %1252 }
 0x46a   : > { %v1295_v59 = vmul.f32 0.015625, %v1250_v50  ;;  %v1296_v8 = vmul.f32 0.015625, %v1253_v4  ;;  %v1326_v19 = vmul.f32 %v3239_v14, %v3239_v14 }
 0x46c   : > { %v3243_v15 = vsub.f32 %v1184_v17, %v1295_v59  ;;  %v3245_v39 = vsub.f32 %v2236_v18, %v1296_v8  ;;  %v1342_v20 = vsel %vm1244_vm1, %v1326_v19, 0.0 }
 0x46d   : > { %v1256_v13 = vpop.xlane.xlu1 %1255  ;;  %1343 = vadd.xlane.f32.xlu0 %v1342_v20  ;;  %v1259_v16 = vpop.xlane.xlu0 %1258 }
 0x46e   : > { %v1297_v53 = vmul.f32 0.015625, %v1256_v13  ;;  %v1298_v54 = vmul.f32 0.015625, %v1259_v16  ;;  %v1327_v49 = vmul.f32 %v3243_v15, %v3243_v15  ;;  %v1328_v21 = vmul.f32 %v3245_v39, %v3245_v39 }
 0x470   : > { %v3252_v23 = vsub.f32 %v2237_v51, %v1297_v53  ;;  %v3254_v44 = vsub.f32 %v1197_v1, %v1298_v54  ;;  %v1345_v24 = vsel %vm1244_vm1, %v1327_v49, 0.0  ;;  %v1348_v25 = vsel %vm1244_vm1, %v1328_v21, 0.0 }
 0x471   : > { %v1262_v26 = vpop.xlane.xlu1 %1261  ;;  %1346 = vadd.xlane.f32.xlu1 %v1345_v24  ;;  %1349 = vadd.xlane.f32.xlu0 %v1348_v25  ;;  %v1265_v27 = vpop.xlane.xlu0 %1264 }
 0x472   : > { %v1299_v28 = vmul.f32 0.015625, %v1262_v26  ;;  %v1300_v60 = vmul.f32 0.015625, %v1265_v27  ;;  %v1329_v6 = vmul.f32 %v3252_v23, %v3252_v23  ;;  %v1330_v29 = vmul.f32 %v3254_v44, %v3254_v44  ;;  %v2347_v27 = vld [vmem:[#allocation5 + $0x18] sm:$0xff]  }
 0x473   : > { %2250 = vmatprep.subr.bf16.mxu1 %v2347_v27 }
 0x474   : > { %v3262_v48 = vsub.f32 %v1200_v9, %v1299_v28  ;;  %v3265_v7 = vsub.f32 %v3196_v37, %v1300_v60  ;;  %v1351_v32 = vsel %vm1244_vm1, %v1329_v6, 0.0  ;;  %v1354_v33 = vsel %vm1244_vm1, %v1330_v29, 0.0  ;;  %2251 = vmatpush3.bf16.msra.mxu1 %v2347_v27  ;;  %v2348_v28 = vld [vmem:[#allocation5 + $0x10] sm:$0xff]   ;;  %v2350_v60 = vld [vmem:[#allocation5] sm:$0xff]  }
 0x475   : > { %v1268_v3 = vpop.xlane.xlu1 %1267  ;;  %1352 = vadd.xlane.f32.xlu1 %v1351_v32  ;;  %1355 = vadd.xlane.f32.xlu0 %v1354_v33  ;;  %v1271_v18 = vpop.xlane.xlu0 %1270 }
 0x476   : > { %v1301_v34 = vmul.f32 0.015625, %v1268_v3  ;;  %v1302_v35 = vmul.f32 0.015625, %v1271_v18  ;;  %v1331_v51 = vmul.f32 %v3262_v48, %v3262_v48  ;;  %v1332_v17 = vmul.f32 %v3265_v7, %v3265_v7  ;;  %2252 = vmatprep.subr.bf16.mxu1 %v2348_v28 }
 0x478   : > { %v3274_v36 = vsub.f32 %v3200_v41, %v1301_v34  ;;  %v3277_v56 = vsub.f32 %v3207_v5, %v1302_v35  ;;  %v1357_v37 = vsel %vm1244_vm1, %v1331_v51, 0.0  ;;  %v1360_v1 = vsel %vm1244_vm1, %v1332_v17, 0.0  ;;  %2253 = vmatpush3.bf16.msra.mxu1 %v2348_v28 }
 0x479   : > { %v1274_v38 = vpop.xlane.xlu1 %1273  ;;  %1358 = vadd.xlane.f32.xlu1 %v1357_v37  ;;  %1361 = vadd.xlane.f32.xlu0 %v1360_v1  ;;  %v1277_v40 = vpop.xlane.xlu0 %1276 }
 0x47a   : > { %v1303_v9 = vmul.f32 0.015625, %v1274_v38  ;;  %v1304_v42 = vmul.f32 0.015625, %v1277_v40  ;;  %v1333_v45 = vmul.f32 %v3274_v36, %v3274_v36  ;;  %v1334_v41 = vmul.f32 %v3277_v56, %v3277_v56 }
 0x47c   : > { %v3286_v10 = vsub.f32 %v3215_v22, %v1303_v9  ;;  %v3289_v5 = vsub.f32 %v3205_v46, %v1304_v42  ;;  %v1363_v43 = vsel %vm1244_vm1, %v1333_v45, 0.0  ;;  %v1366_v52 = vsel %vm1244_vm1, %v1334_v41, 0.0 }
 0x47d   : > { %v1280_v55 = vpop.xlane.xlu1 %1279  ;;  %1364 = vadd.xlane.f32.xlu1 %v1363_v43  ;;  %1367 = vadd.xlane.f32.xlu0 %v1366_v52  ;;  %v1283_v12 = vpop.xlane.xlu0 %1282 }
 0x47e   : > { %v1305_v47 = vmul.f32 0.015625, %v1280_v55  ;;  %v1306_v30 = vmul.f32 0.015625, %v1283_v12  ;;  %v1335_v63 = vmul.f32 %v3286_v10, %v3286_v10  ;;  %v1336_v22 = vmul.f32 %v3289_v5, %v3289_v5 }
 0x480   : > { %v3298_v31 = vsub.f32 %v3213_v11, %v1305_v47  ;;  %v3301_v46 = vsub.f32 %v3223_v58, %v1306_v30  ;;  %v1369_v0 = vsel %vm1244_vm1, %v1335_v63, 0.0  ;;  %v1372_v2 = vsel %vm1244_vm1, %v1336_v22, 0.0 }
 0x481   : > { %1370 = vadd.xlane.f32.xlu1 %v1369_v0  ;;  %v1286_v50 = vpop.xlane.xlu1 %1285  ;;  %1373 = vadd.xlane.f32.xlu0 %v1372_v2  ;;  %v1289_v4 = vpop.xlane.xlu0 %1288  ;;  %v3332_v0 = vld [vmem:[%s3579_s5] ss:$0 sm:$0xff] }
 0x482   : > { %v1307_v59 = vmul.f32 0.015625, %v1286_v50  ;;  %v1308_v8 = vmul.f32 0.015625, %v1289_v4  ;;  %v1337_v19 = vmul.f32 %v3298_v31, %v3298_v31  ;;  %v1338_v11 = vmul.f32 %v3301_v46, %v3301_v46 }
 0x484   : > { %v3310_v20 = vsub.f32 %v3231_v62, %v1307_v59  ;;  %v3313_v58 = vsub.f32 %v3221_v57, %v1308_v8  ;;  %v1375_v13 = vsel %vm1244_vm1, %v1337_v19, 0.0  ;;  %v1378_v16 = vsel %vm1244_vm1, %v1338_v11, 0.0  ;;  %v3338_v59 = vld [vmem:[%s3580_s6] ss:$0 sm:$0xff] }
 0x485   : > { %1376 = vadd.xlane.f32.xlu1 %v1375_v13  ;;  %v1292_v53 = vpop.xlane.xlu1 %1291  ;;  %1379 = vadd.xlane.f32.xlu0 %v1378_v16 }
 0x486   : > { %v1309_v54 = vmul.f32 0.015625, %v1292_v53  ;;  %v1339_v49 = vmul.f32 %v3310_v20, %v3310_v20  ;;  %v1340_v21 = vmul.f32 %v3313_v58, %v3313_v58 }
 0x488   : > { %v3322_v62 = vsub.f32 %v3229_v61, %v1309_v54  ;;  %v1381_v57 = vsel %vm1244_vm1, %v1339_v49, 0.0  ;;  %v1384_v24 = vsel %vm1244_vm1, %v1340_v21, 0.0  ;;  %v2349_v61 = vld [vmem:[#allocation5 + $0x8] sm:$0xff]  }
 0x489   : > { %1382 = vadd.xlane.f32.xlu1 %v1381_v57  ;;  %1385 = vadd.xlane.f32.xlu0 %v1384_v24 }
 0x48a   : > { %v1341_v25 = vmul.f32 %v3322_v62, %v3322_v62  ;;  %2254 = vmatprep.subr.bf16.mxu1 %v2349_v61 }
 0x48b   : > { %2255 = vmatpush3.bf16.msra.mxu1 %v2349_v61 }
 0x48c   : > { %v1387_v26 = vsel %vm1244_vm1, %v1341_v25, 0.0  ;;  %2256 = vmatprep.subr.bf16.mxu1 %v2350_v60 }
 0x48d   : > { %1388 = vadd.xlane.f32.xlu1 %v1387_v26 }
 0x48f   : > { %2257 = vmatpush3.bf16.msra.mxu1 %v2350_v60 }
 0x4f6   : > { %v1344_v6 = vpop.xlane.xlu0 %1343 }
 0x4f7   : > { %v1390_v29 = vmul.f32 0.015625, %v1344_v6 }
 0x4f9   : > { %v1406_v32 = vadd.f32 1e-08, %v1390_v29 }
 0x4fa   : > { %v1347_v33 = vpop.xlane.xlu1 %1346  ;;  %v1350_v3 = vpop.xlane.xlu0 %1349 }
 0x4fb   : > { %2383 = vrsqrt.f32 %v1406_v32  ;;  %v1391_v18 = vmul.f32 0.015625, %v1347_v33  ;;  %v1392_v34 = vmul.f32 0.015625, %v1350_v3 }
 0x4fd   : > { %v1407_v35 = vadd.f32 1e-08, %v1391_v18  ;;  %v1408_v51 = vadd.f32 1e-08, %v1392_v34 }
 0x4fe   : > { %v1353_v17 = vpop.xlane.xlu1 %1352  ;;  %v1356_v37 = vpop.xlane.xlu0 %1355 }
 0x4ff   : > { %2385 = vrsqrt.f32 %v1407_v35  ;;  %v1393_v1 = vmul.f32 0.015625, %v1353_v17  ;;  %v1394_v38 = vmul.f32 0.015625, %v1356_v37 }
 0x500   : > { %2387 = vrsqrt.f32 %v1408_v51 }
 0x501   : > { %v1409_v40 = vadd.f32 1e-08, %v1393_v1  ;;  %v1410_v9 = vadd.f32 1e-08, %v1394_v38 }
 0x502   : > { %v1359_v42 = vpop.xlane.xlu1 %1358  ;;  %v1362_v45 = vpop.xlane.xlu0 %1361 }
 0x503   : > { %2389 = vrsqrt.f32 %v1409_v40  ;;  %v1395_v41 = vmul.f32 0.015625, %v1359_v42  ;;  %v1396_v43 = vmul.f32 0.015625, %v1362_v45 }
 0x504   : > { %2391 = vrsqrt.f32 %v1410_v9 }
 0x505   : > { %v1411_v52 = vadd.f32 1e-08, %v1395_v41  ;;  %v1412_v55 = vadd.f32 1e-08, %v1396_v43 }
 0x506   : > { %v1365_v12 = vpop.xlane.xlu1 %1364  ;;  %v1368_v47 = vpop.xlane.xlu0 %1367 }
 0x507   : > { %2393 = vrsqrt.f32 %v1411_v52  ;;  %v1397_v30 = vmul.f32 0.015625, %v1365_v12  ;;  %v1398_v63 = vmul.f32 0.015625, %v1368_v47 }
 0x508   : > { %v2384_v22 = vpop.eup %2383  ;;  %2395 = vrsqrt.f32 %v1412_v55 }
 0x509   : > { %v1438_v2 = vmul.f32 %v2384_v22, %v3239_v14  ;;  %v1413_v50 = vadd.f32 1e-08, %v1397_v30  ;;  %v1414_v4 = vadd.f32 1e-08, %v1398_v63 }
 0x50a   : > { %v1371_v8 = vpop.xlane.xlu1 %1370  ;;  %v1374_v19 = vpop.xlane.xlu0 %1373 }
 0x50b   : > { %v1461_v11 = vmul.f32 %v3332_v0, %v1438_v2  ;;  %2397 = vrsqrt.f32 %v1413_v50  ;;  %v1399_v13 = vmul.f32 0.015625, %v1371_v8  ;;  %v1400_v16 = vmul.f32 0.015625, %v1374_v19 }
 0x50c   : > { %v2386_v53 = vpop.eup %2385  ;;  %2399 = vrsqrt.f32 %v1414_v4 }
 0x50d   : > { %v2388_v54 = vpop.eup %2387  ;;  %v3342_v49 = vadd.f32 %v3338_v59, %v1461_v11  ;;  %v1439_v14 = vmul.f32 %v2386_v53, %v3243_v15  ;;  %v1415_v21 = vadd.f32 1e-08, %v1399_v13  ;;  %v1416_v57 = vadd.f32 1e-08, %v1400_v16 }
 0x50e   : > { %v1440_v24 = vmul.f32 %v2388_v54, %v3245_v39  ;;  %v1377_v25 = vpop.xlane.xlu1 %1376  ;;  %v1380_v26 = vpop.xlane.xlu0 %1379 }
 0x50f   : > { %v1462_v27 = vmul.f32 %v3332_v0, %v1439_v14  ;;  %2401 = vrsqrt.f32 %v1415_v21  ;;  %v1401_v28 = vmul.f32 0.015625, %v1377_v25  ;;  %v1402_v61 = vmul.f32 0.015625, %v1380_v26 }
 0x510   : > { %v2390_v60 = vpop.eup %2389  ;;  %2403 = vrsqrt.f32 %v1416_v57  ;;  %v1516_v6 = vmul.f32 0.044715, %v3342_v49  ;;  %v1463_v39 = vmul.f32 %v3332_v0, %v1440_v24 }
 0x511   : > { %v2392_v29 = vpop.eup %2391  ;;  %v3349_v32 = vadd.f32 %v3338_v59, %v1462_v27  ;;  %v1441_v15 = vmul.f32 %v2390_v60, %v3252_v23  ;;  %v1417_v33 = vadd.f32 1e-08, %v1401_v28  ;;  %v1418_v3 = vadd.f32 1e-08, %v1402_v61 }
 0x512   : > { %v1442_v18 = vmul.f32 %v2392_v29, %v3254_v44  ;;  %v1383_v34 = vpop.xlane.xlu1 %1382  ;;  %v1386_v35 = vpop.xlane.xlu0 %1385  ;;  %v1532_v51 = vmul.f32 %v1516_v6, %v3342_v49  ;;  %v1486_v44 = vadd.f32 %v3338_v59, %v1463_v39  ;;  %v3380_v28 = vmul.f32 0.5, %v3342_v49 }
 0x513   : > { %v1464_v17 = vmul.f32 %v3332_v0, %v1441_v15  ;;  %2405 = vrsqrt.f32 %v1417_v33  ;;  %v1403_v37 = vmul.f32 0.015625, %v1383_v34  ;;  %v1404_v1 = vmul.f32 0.015625, %v1386_v35 }
 0x514   : > { %v2394_v38 = vpop.eup %2393  ;;  %2407 = vrsqrt.f32 %v1418_v3  ;;  %v1517_v40 = vmul.f32 0.044715, %v3349_v32  ;;  %v1465_v41 = vmul.f32 %v3332_v0, %v1442_v18  ;;  %v1548_v55 = vmul.f32 %v1532_v51, %v3342_v49 }
 0x515   : > { %v2396_v23 = vpop.eup %2395  ;;  %v1443_v9 = vmul.f32 %v2394_v38, %v3262_v48  ;;  %v1419_v42 = vadd.f32 1e-08, %v1403_v37  ;;  %v1420_v45 = vadd.f32 1e-08, %v1404_v1  ;;  %v1487_v12 = vadd.f32 %v3338_v59, %v1464_v17 }
 0x516   : > { %v1389_v43 = vpop.xlane.xlu1 %1388  ;;  %v1533_v52 = vmul.f32 %v1517_v40, %v3349_v32  ;;  %v1444_v47 = vmul.f32 %v2396_v23, %v3265_v7  ;;  %v1564_v2 = vadd.f32 %v1548_v55, %v3342_v49  ;;  %v3369_v19 = vadd.f32 %v3338_v59, %v1465_v41 }
 0x517   : > { %2409 = vrsqrt.f32 %v1419_v42  ;;  %v1405_v30 = vmul.f32 0.015625, %v1389_v43  ;;  %v1466_v48 = vmul.f32 %v3332_v0, %v1443_v9  ;;  %v1518_v16 = vmul.f32 0.044715, %v1486_v44 }
 0x518   : > { %v2398_v63 = vpop.eup %2397  ;;  %2411 = vrsqrt.f32 %v1420_v45  ;;  %v1549_v22 = vmul.f32 %v1533_v52, %v3349_v32  ;;  %v1580_v7 = vmul.f32 0.7978846, %v1564_v2  ;;  %v1467_v13 = vmul.f32 %v3332_v0, %v1444_v47 }
 0x519   : > { %v2400_v50 = vpop.eup %2399  ;;  %v1445_v4 = vmul.f32 %v2398_v63, %v3274_v36  ;;  %v1421_v8 = vadd.f32 1e-08, %v1405_v30  ;;  %v1519_v53 = vmul.f32 0.044715, %v1487_v12  ;;  %v3374_v14 = vadd.f32 %v3338_v59, %v1466_v48 }
 0x51a   : > { %v1565_v11 = vadd.f32 %v1549_v22, %v3349_v32  ;;  %v1446_v24 = vmul.f32 %v2400_v50, %v3277_v56  ;;  %v1534_v25 = vmul.f32 %v1518_v16, %v1486_v44  ;;  %v3383_v61 = vadd.f32 %v3338_v59, %v1467_v13 }
 0x51b   : > { %2413 = vrsqrt.f32 %v1421_v8  ;;  %v1468_v21 = vmul.f32 %v3332_v0, %v1445_v4  ;;  %v1535_v26 = vmul.f32 %v1519_v53, %v1487_v12  ;;  %v1520_v29 = vmul.f32 0.044715, %v3369_v19 }
 0x51c   : > { %v2402_v54 = vpop.eup %2401  ;;  %v1581_v57 = vmul.f32 0.7978846, %v1565_v11  ;;  %2415 = vtanh.f32 %v1580_v7  ;;  %v1550_v60 = vmul.f32 %v1534_v25, %v1486_v44  ;;  %v1501_v3 = vmul.f32 0.5, %v3349_v32 }
 0x51d   : > { %v2404_v36 = vpop.eup %2403  ;;  %v1447_v27 = vmul.f32 %v2402_v54, %v3286_v10  ;;  %v1551_v6 = vmul.f32 %v1535_v26, %v1487_v12  ;;  %v3387_v33 = vadd.f32 %v3338_v59, %v1468_v21  ;;  %v1521_v10 = vmul.f32 0.044715, %v3374_v14 }
 0x51e   : > { %2417 = vtanh.f32 %v1581_v57  ;;  %v1448_v56 = vmul.f32 %v2404_v36, %v3289_v5  ;;  %v1469_v39 = vmul.f32 %v3332_v0, %v1446_v24  ;;  %v3393_v18 = vmul.f32 0.5, %v1486_v44 }
 0x51f   : > { %v1566_v34 = vadd.f32 %v1550_v60, %v1486_v44  ;;  %v1567_v35 = vadd.f32 %v1551_v6, %v1487_v12  ;;  %v1470_v51 = vmul.f32 %v3332_v0, %v1447_v27  ;;  %v1536_v37 = vmul.f32 %v1520_v29, %v3369_v19 }
 0x520   : > { %v2406_v15 = vpop.eup %2405  ;;  %v1537_v1 = vmul.f32 %v1521_v10, %v3374_v14  ;;  %v1522_v40 = vmul.f32 0.044715, %v3383_v61  ;;  %v1471_v9 = vmul.f32 %v3332_v0, %v1448_v56  ;;  %v1523_v44 = vmul.f32 0.044715, %v3387_v33 }
 0x521   : > { %v2408_v49 = vpop.eup %2407  ;;  %v1449_v17 = vmul.f32 %v2406_v15, %v3298_v31  ;;  %v1582_v32 = vmul.f32 0.7978846, %v1566_v34  ;;  %v1583_v38 = vmul.f32 0.7978846, %v1567_v35  ;;  %v1552_v42 = vmul.f32 %v1536_v37, %v3369_v19 }
 0x522   : > { %v1450_v5 = vmul.f32 %v2408_v49, %v3301_v46  ;;  %v1553_v45 = vmul.f32 %v1537_v1, %v3374_v14  ;;  %v3406_v43 = vmul.f32 0.5, %v1487_v12  ;;  %v1538_v46 = vmul.f32 %v1522_v40, %v3383_v61 }
 0x523   : > { %2419 = vtanh.f32 %v1582_v32  ;;  %v3410_v52 = vadd.f32 %v3338_v59, %v1469_v39  ;;  %v1472_v55 = vmul.f32 %v3332_v0, %v1449_v17  ;;  %v1568_v47 = vadd.f32 %v1552_v42, %v3369_v19 }
 0x524   : > { %v2410_v23 = vpop.eup %2409  ;;  %2421 = vtanh.f32 %v1583_v38  ;;  %v1473_v30 = vmul.f32 %v3332_v0, %v1450_v5  ;;  %v1569_v63 = vadd.f32 %v1553_v45, %v3374_v14  ;;  %v1539_v48 = vmul.f32 %v1523_v44, %v3387_v33 }
 0x525   : > { %v2412_v31 = vpop.eup %2411  ;;  %v1451_v41 = vmul.f32 %v2410_v23, %v3310_v20  ;;  %v1554_v20 = vmul.f32 %v1538_v46, %v3383_v61  ;;  %v3419_v22 = vadd.f32 %v3338_v59, %v1470_v51  ;;  %v3422_v2 = vadd.f32 %v3338_v59, %v1471_v9 }
 0x526   : > { %v1452_v50 = vmul.f32 %v2412_v31, %v3313_v58  ;;  %v1584_v4 = vmul.f32 0.7978846, %v1568_v47  ;;  %v1585_v13 = vmul.f32 0.7978846, %v1569_v63  ;;  %v1555_v16 = vmul.f32 %v1539_v48, %v3387_v33 }
 0x527   : > { %v1474_v11 = vmul.f32 %v3332_v0, %v1451_v41  ;;  %v3429_v53 = vadd.f32 %v3338_v59, %v1472_v55  ;;  %v1570_v21 = vadd.f32 %v1554_v20, %v3383_v61  ;;  %v3433_v36 = vadd.f32 %v3338_v59, %v1473_v30 }
 0x528   : > { %v2414_v12 = vpop.eup %2413  ;;  %2423 = vtanh.f32 %v1584_v4  ;;  %v1571_v58 = vadd.f32 %v1555_v16, %v3387_v33  ;;  %v1524_v24 = vmul.f32 0.044715, %v3410_v52  ;;  %v1525_v27 = vmul.f32 0.044715, %v3419_v22 }
 0x529   : > { %v2416_v8 = vpop.eup %2415  ;;  %v1453_v7 = vmul.f32 %v2414_v12, %v3322_v62  ;;  %2425 = vtanh.f32 %v1585_v13  ;;  %v1475_v62 = vmul.f32 %v3332_v0, %v1452_v50  ;;  %v1586_v26 = vmul.f32 0.7978846, %v1570_v21 }
 0x52a   : > { %v1612_v54 = vadd.f32 1.0, %v2416_v8  ;;  %v3440_v60 = vadd.f32 %v3338_v59, %v1474_v11  ;;  %v1587_v29 = vmul.f32 0.7978846, %v1571_v58  ;;  %v1540_v15 = vmul.f32 %v1524_v24, %v3410_v52 }
 0x52b   : > { %v2418_v57 = vpop.eup %2417  ;;  %v1476_v6 = vmul.f32 %v3332_v0, %v1453_v7  ;;  %2427 = vtanh.f32 %v1586_v26  ;;  %v1541_v49 = vmul.f32 %v1525_v27, %v3419_v22  ;;  %v1526_v34 = vmul.f32 0.044715, %v3422_v2 }
 0x52c   : > { %v1613_v25 = vadd.f32 1.0, %v2418_v57  ;;  %v1628_v56 = vmul.f32 %v1612_v54, %v3380_v28  ;;  %2429 = vtanh.f32 %v1587_v29  ;;  %v1556_v39 = vmul.f32 %v1540_v15, %v3410_v52 }
 0x52d   : > { %v1527_v35 = vmul.f32 0.044715, %v3429_v53  ;;  %v1504_v17 = vmul.f32 0.5, %v3369_v19  ;;  %v1505_v0 = vmul.f32 0.5, %v3374_v14  ;;  %v1557_v37 = vmul.f32 %v1541_v49, %v3419_v22 }
 0x52e   : > { %v1629_v10 = vmul.f32 %v1613_v25, %v1501_v3  ;;  %v1572_v28 = vadd.f32 %v1556_v39, %v3410_v52  ;;  %v1542_v3 = vmul.f32 %v1526_v34, %v3422_v2  ;;  %v1528_v5 = vmul.f32 0.044715, %v3433_v36 }
 0x52f   : > { %v1543_v1 = vmul.f32 %v1527_v35, %v3429_v53  ;;  %v3457_v38 = vadd.f32 %v3338_v59, %v1475_v62  ;;  %v3460_v40 = vadd.f32 %v3338_v59, %v1476_v6  ;;  %v1573_v19 = vadd.f32 %v1557_v37, %v3419_v22 }
 0x530   : > { %v1644_v51 = vpack.c.bf16 %v1629_v10, %v1628_v56  ;;  %v2420_v32 = vpop.eup %2419  ;;  %v1529_v14 = vmul.f32 0.044715, %v3440_v60  ;;  %v1588_v42 = vmul.f32 0.7978846, %v1572_v28  ;;  %v1558_v45 = vmul.f32 %v1542_v3, %v3422_v2 }
 0x531   : > { %v2422_v23 = vpop.eup %2421  ;;  %v1614_v9 = vadd.f32 1.0, %v2420_v32  ;;  %v1559_v44 = vmul.f32 %v1543_v1, %v3429_v53  ;;  %v1589_v41 = vmul.f32 0.7978846, %v1573_v19  ;;  %v1544_v46 = vmul.f32 %v1528_v5, %v3433_v36 }
 0x532   : > { %2258 = vmatprep.mubr.msk.bf16.mxu1 %vm1244_vm1, %v1644_v51  ;;  %v1615_v31 = vadd.f32 1.0, %v2422_v23  ;;  %v1545_v59 = vmul.f32 %v1529_v14, %v3440_v60  ;;  %2431 = vtanh.f32 %v1588_v42  ;;  %v1574_v47 = vadd.f32 %v1558_v45, %v3422_v2 }
 0x533   : > { %v1630_v55 = vmul.f32 %v1614_v9, %v3393_v18  ;;  %v1575_v30 = vadd.f32 %v1559_v44, %v3429_v53  ;;  %2433 = vtanh.f32 %v1589_v41  ;;  %v1560_v48 = vmul.f32 %v1544_v46, %v3433_v36 }
 0x534   : > { %v1631_v63 = vmul.f32 %v1615_v31, %v3406_v43  ;;  %v1561_v20 = vmul.f32 %v1545_v59, %v3440_v60  ;;  %v1590_v50 = vmul.f32 0.7978846, %v1574_v47  ;;  %v1530_v8 = vmul.f32 0.044715, %v3457_v38 }
 0x535   : > { %v2424_v12 = vpop.eup %2423  ;;  %v1591_v4 = vmul.f32 0.7978846, %v1575_v30  ;;  %v1576_v13 = vadd.f32 %v1560_v48, %v3433_v36  ;;  %v1531_v43 = vmul.f32 0.044715, %v3460_v40  ;;  %v1506_v29 = vmul.f32 0.5, %v3383_v61 }
 0x536   : > { %v2426_v11 = vpop.eup %2425  ;;  %v1645_v7 = vpack.c.bf16 %v1631_v63, %v1630_v55  ;;  %v1616_v18 = vadd.f32 1.0, %v2424_v12  ;;  %v1577_v16 = vadd.f32 %v1561_v20, %v3440_v60  ;;  %2435 = vtanh.f32 %v1590_v50 }
 0x537   : > { %v1617_v54 = vadd.f32 1.0, %v2426_v11  ;;  %v1546_v21 = vmul.f32 %v1530_v8, %v3457_v38  ;;  %2437 = vtanh.f32 %v1591_v4  ;;  %v1592_v57 = vmul.f32 0.7978846, %v1576_v13 }
 0x538   : > { %2259 = vmatmul.mubr.msk.bf16.vlgmr.msra.gmra.mxu1 %vm1244_vm1, %v1645_v7  ;;  %v1593_v58 = vmul.f32 0.7978846, %v1577_v16  ;;  %v2428_v24 = vpop.eup %2427  ;;  %v1632_v62 = vmul.f32 %v1616_v18, %v1504_v17  ;;  %v1547_v26 = vmul.f32 %v1531_v43, %v3460_v40  ;;  %v1507_v15 = vmul.f32 0.5, %v3387_v33 }
 0x539   : > { %v1633_v25 = vmul.f32 %v1617_v54, %v1505_v0  ;;  %v1562_v27 = vmul.f32 %v1546_v21, %v3457_v38  ;;  %v2430_v6 = vpop.eup %2429  ;;  %v1618_v56 = vadd.f32 1.0, %v2428_v24  ;;  %2439 = vtanh.f32 %v1592_v57 }
 0x53a   : > { %v1619_v49 = vadd.f32 1.0, %v2430_v6  ;;  %2441 = vtanh.f32 %v1593_v58  ;;  %v1563_v39 = vmul.f32 %v1547_v26, %v3460_v40  ;;  %v1508_v1 = vmul.f32 0.5, %v3410_v52 }
 0x53b   : > { %v1646_v10 = vpack.c.bf16 %v1633_v25, %v1632_v62  ;;  %v1578_v34 = vadd.f32 %v1562_v27, %v3457_v38  ;;  %v1634_v35 = vmul.f32 %v1618_v56, %v1506_v29  ;;  %v1509_v5 = vmul.f32 0.5, %v3419_v22 }
 0x53c   : > { %v1635_v51 = vmul.f32 %v1619_v49, %v1507_v15  ;;  %v1579_v17 = vadd.f32 %v1563_v39, %v3460_v40  ;;  %v1510_v44 = vmul.f32 0.5, %v3422_v2  ;;  %v1511_v31 = vmul.f32 0.5, %v3429_v53 }
 0x53d   : > { %2262 = vmatprep.mubr.msk.bf16.mxu1 %vm1244_vm1, %v1646_v10  ;;  %v1594_v0 = vmul.f32 0.7978846, %v1578_v34  ;;  %v1512_v22 = vmul.f32 0.5, %v3433_v36  ;;  %v1513_v30 = vmul.f32 0.5, %v3440_v60  ;;  %v1514_v8 = vmul.f32 0.5, %v3457_v38 }
 0x53e   : > { %v1647_v37 = vpack.c.bf16 %v1635_v51, %v1634_v35  ;;  %v1595_v61 = vmul.f32 0.7978846, %v1579_v17  ;;  %v1515_v11 = vmul.f32 0.5, %v3460_v40 }
 0x53f   : > { %v2432_v28 = vpop.eup %2431  ;;  %2443 = vtanh.f32 %v1594_v0 }
 0x540   : > { %v2434_v33 = vpop.eup %2433  ;;  %2263 = vmatmul.mubr.msk.bf16.gmra.mxu1 %vm1244_vm1, %v1647_v37  ;;  %v1620_v3 = vadd.f32 1.0, %v2432_v28  ;;  %2445 = vtanh.f32 %v1595_v61 }
 0x541   : > { %v1621_v32 = vadd.f32 1.0, %v2434_v33 }
 0x542   : > { %v1636_v14 = vmul.f32 %v1620_v3, %v1508_v1 }
 0x543   : > { %v2436_v19 = vpop.eup %2435  ;;  %v1637_v23 = vmul.f32 %v1621_v32, %v1509_v5 }
 0x544   : > { %v2438_v9 = vpop.eup %2437  ;;  %v1622_v42 = vadd.f32 1.0, %v2436_v19 }
 0x545   : > { %v1648_v45 = vpack.c.bf16 %v1637_v23, %v1636_v14  ;;  %v1623_v41 = vadd.f32 1.0, %v2438_v9 }
 0x546   : > { %v2440_v46 = vpop.eup %2439  ;;  %v1638_v55 = vmul.f32 %v1622_v42, %v1510_v44 }
 0x547   : > { %v2442_v59 = vpop.eup %2441  ;;  %2266 = vmatprep.mubr.msk.bf16.mxu1 %vm1244_vm1, %v1648_v45  ;;  %v1639_v52 = vmul.f32 %v1623_v41, %v1511_v31  ;;  %v1624_v47 = vadd.f32 1.0, %v2440_v46 }
 0x548   : > { %v1625_v63 = vadd.f32 1.0, %v2442_v59 }
 0x549   : > { %v1649_v48 = vpack.c.bf16 %v1639_v52, %v1638_v55  ;;  %v1640_v20 = vmul.f32 %v1624_v47, %v1512_v22 }
 0x54a   : > { %v1641_v12 = vmul.f32 %v1625_v63, %v1513_v30 }
 0x54b   : > { %2267 = vmatmul.mubr.msk.bf16.gmra.mxu1 %vm1244_vm1, %v1649_v48 }
 0x54c   : > { %v2444_v2 = vpop.eup %2443  ;;  %v1650_v53 = vpack.c.bf16 %v1641_v12, %v1640_v20 }
 0x54d   : > { %v2446_v50 = vpop.eup %2445  ;;  %v1626_v4 = vadd.f32 1.0, %v2444_v2 }
 0x54e   : > { %2270 = vmatprep.mubr.msk.bf16.mxu1 %vm1244_vm1, %v1650_v53  ;;  %v1627_v7 = vadd.f32 1.0, %v2446_v50 }
 0x54f   : > { %v1642_v36 = vmul.f32 %v1626_v4, %v1514_v8 }
 0x550   : > { %v1643_v18 = vmul.f32 %v1627_v7, %v1515_v11 }
 0x552   : > { %v1651_v60 = vpack.c.bf16 %v1643_v18, %v1642_v36 }
 0x554   : > { %2271 = vmatmul.mubr.msk.bf16.gmra.mxu1 %vm1244_vm1, %v1651_v60 }
 0x5f8   : > { %v2260_v13 = vpop.f32.mrf.mxu1 }
 0x5f9   : > { %v2100_v16 = vmul.f32 -1.442695, %v2260_v13 }
 0x5fa   : > { %v1742_v54 = vpop.f32.mrf.mxu1 }
 0x5fb   : > { %2447 = vpow2.f32 %v2100_v16  ;;  %v2098_v43 = vmul.f32 -1.442695, %v1742_v54 }
 0x5fc   : > { %v2261_v21 = vpop.f32.mrf.mxu1 }
 0x5fd   : > { %2449 = vpow2.f32 %v2098_v43  ;;  %v2101_v57 = vmul.f32 -1.442695, %v2261_v21 }
 0x5fe   : > { %v1745_v58 = vpop.f32.mrf.mxu1 }
 0x5ff   : > { %2451 = vpow2.f32 %v2101_v57  ;;  %v2099_v24 = vmul.f32 -1.442695, %v1745_v58 }
 0x600   : > { %v2264_v38 = vpop.f32.mrf.mxu1 }
 0x601   : > { %2453 = vpow2.f32 %v2099_v24  ;;  %v2104_v40 = vmul.f32 -1.442695, %v2264_v38 }
 0x602   : > { %v1758_v62 = vpop.f32.mrf.mxu1 }
 0x603   : > { %2455 = vpow2.f32 %v2104_v40  ;;  %v2102_v25 = vmul.f32 -1.442695, %v1758_v62 }
 0x604   : > { %v2265_v26 = vpop.f32.mrf.mxu1 }
 0x605   : > { %2457 = vpow2.f32 %v2102_v25  ;;  %v2105_v27 = vmul.f32 -1.442695, %v2265_v26 }
 0x606   : > { %v1761_v6 = vpop.f32.mrf.mxu1 }
 0x607   : > { %2459 = vpow2.f32 %v2105_v27  ;;  %v2103_v15 = vmul.f32 -1.442695, %v1761_v6 }
 0x608   : > { %v2448_v29 = vpop.eup %2447 }
 0x609   : > { %v1855_v56 = vadd.f32 1.0, %v2448_v29  ;;  %2461 = vpow2.f32 %v2103_v15 }
 0x60a   : > { %v2450_v10 = vpop.eup %2449 }
 0x60b   : > { %2463 = vrcp.f32 %v1855_v56  ;;  %v1853_v49 = vadd.f32 1.0, %v2450_v10  ;;  %v2268_v34 = vpop.f32.mrf.mxu1 }
 0x60c   : > { %v2452_v39 = vpop.eup %2451  ;;  %v2108_v51 = vmul.f32 -1.442695, %v2268_v34 }
 0x60d   : > { %2465 = vrcp.f32 %v1853_v49  ;;  %v1856_v35 = vadd.f32 1.0, %v2452_v39  ;;  %v1774_v0 = vpop.f32.mrf.mxu1 }
 0x60e   : > { %v2454_v17 = vpop.eup %2453  ;;  %v2106_v61 = vmul.f32 -1.442695, %v1774_v0 }
 0x60f   : > { %2467 = vrcp.f32 %v1856_v35  ;;  %v1854_v37 = vadd.f32 1.0, %v2454_v17  ;;  %v2269_v28 = vpop.f32.mrf.mxu1 }
 0x610   : > { %2469 = vpow2.f32 %v2108_v51  ;;  %v2456_v33 = vpop.eup %2455  ;;  %v2109_v3 = vmul.f32 -1.442695, %v2269_v28 }
 0x611   : > { %2471 = vrcp.f32 %v1854_v37  ;;  %v1859_v1 = vadd.f32 1.0, %v2456_v33  ;;  %v1777_v5 = vpop.f32.mrf.mxu1 }
 0x612   : > { %2473 = vpow2.f32 %v2106_v61  ;;  %v2458_v32 = vpop.eup %2457  ;;  %v2107_v19 = vmul.f32 -1.442695, %v1777_v5 }
 0x613   : > { %2475 = vpow2.f32 %v2109_v3  ;;  %v1857_v14 = vadd.f32 1.0, %v2458_v32 }
 0x614   : > { %2477 = vrcp.f32 %v1859_v1  ;;  %v2460_v23 = vpop.eup %2459  ;;  %v2272_v9 = vpop.f32.mrf.mxu1 }
 0x615   : > { %2479 = vpow2.f32 %v2107_v19  ;;  %v1860_v42 = vadd.f32 1.0, %v2460_v23  ;;  %v2112_v45 = vmul.f32 -1.442695, %v2272_v9 }
 0x616   : > { %2481 = vrcp.f32 %v1857_v14  ;;  %v2462_v44 = vpop.eup %2461  ;;  %v1790_v31 = vpop.f32.mrf.mxu1 }
 0x617   : > { %2483 = vrcp.f32 %v1860_v42  ;;  %v1858_v46 = vadd.f32 1.0, %v2462_v44  ;;  %v2110_v59 = vmul.f32 -1.442695, %v1790_v31 }
 0x618   : > { %v2464_v41 = vpop.eup %2463  ;;  %2485 = vpow2.f32 %v2112_v45  ;;  %v2273_v55 = vpop.f32.mrf.mxu1 }
 0x619   : > { %1903 = vst [vmem:[%s3505_s26 + $0x10] sm:$0xff] %v2464_v41  ;;  %2487 = vrcp.f32 %v1858_v46  ;;  %v2113_v47 = vmul.f32 -1.442695, %v2273_v55 }
 0x61a   : > { %v2466_v52 = vpop.eup %2465  ;;  %2489 = vpow2.f32 %v2110_v59  ;;  %v1793_v22 = vpop.f32.mrf.mxu1 }
 0x61b   : > { %1901 = vst [vmem:[%s3505_s26] sm:$0xff] %v2466_v52  ;;  %2491 = vpow2.f32 %v2113_v47  ;;  %v2111_v63 = vmul.f32 -1.442695, %v1793_v22 }
 0x61c   : > { %v2468_v30 = vpop.eup %2467 }
 0x61d   : > { %v2470_v48 = vpop.eup %2469  ;;  %1904 = vst [vmem:[%s3505_s26 + $0x18] sm:$0xff] %v2468_v30  ;;  %2493 = vpow2.f32 %v2111_v63 }
 0x61e   : > { %v2472_v20 = vpop.eup %2471  ;;  %v1863_v12 = vadd.f32 1.0, %v2470_v48 }
 0x61f   : > { %v2474_v2 = vpop.eup %2473  ;;  %1902 = vst [vmem:[%s3505_s26 + $0x8] sm:$0xff] %v2472_v20 }
 0x620   : > { %v2476_v53 = vpop.eup %2475  ;;  %2495 = vrcp.f32 %v1863_v12  ;;  %v1861_v50 = vadd.f32 1.0, %v2474_v2 }
 0x621   : > { %v2478_v4 = vpop.eup %2477  ;;  %v1864_v8 = vadd.f32 1.0, %v2476_v53 }
 0x622   : > { %v2480_v11 = vpop.eup %2479  ;;  %1907 = vst [vmem:[%s3505_s26 + $0x30] sm:$0xff] %v2478_v4  ;;  %2497 = vrcp.f32 %v1861_v50 }
 0x623   : > { %v2482_v7 = vpop.eup %2481  ;;  %2499 = vrcp.f32 %v1864_v8  ;;  %v1862_v36 = vadd.f32 1.0, %v2480_v11 }
 0x624   : > { %1905 = vst [vmem:[%s3505_s26 + $0x20] sm:$0xff] %v2482_v7  ;;  %v2484_v18 = vpop.eup %2483 }
 0x625   : > { %2501 = vrcp.f32 %v1862_v36  ;;  %v2486_v60 = vpop.eup %2485  ;;  %1908 = vst [vmem:[%s3505_s26 + $0x38] sm:$0xff] %v2484_v18 }
 0x626   : > { %v2488_v13 = vpop.eup %2487  ;;  %v1867_v16 = vadd.f32 1.0, %v2486_v60 }
 0x627   : > { %v2490_v54 = vpop.eup %2489  ;;  %1906 = vst [vmem:[%s3505_s26 + $0x28] sm:$0xff] %v2488_v13 }
 0x628   : > { %v2492_v43 = vpop.eup %2491  ;;  %2503 = vrcp.f32 %v1867_v16  ;;  %v1865_v21 = vadd.f32 1.0, %v2490_v54 }
 0x629   : > { %v1868_v57 = vadd.f32 1.0, %v2492_v43 }
 0x62a   : > { %v2494_v58 = vpop.eup %2493  ;;  %2505 = vrcp.f32 %v1865_v21 }
 0x62b   : > { %2507 = vrcp.f32 %v1868_v57  ;;  %v1866_v24 = vadd.f32 1.0, %v2494_v58 }
 0x62d   : > { %v2496_v38 = vpop.eup %2495  ;;  %2509 = vrcp.f32 %v1866_v24 }
 0x62e   : > { %1911 = vst [vmem:[%s3505_s26 + $0x50] sm:$0xff] %v2496_v38 }
 0x62f   : > { %v2498_v40 = vpop.eup %2497 }
 0x630   : > { %v2500_v62 = vpop.eup %2499  ;;  %1909 = vst [vmem:[%s3505_s26 + $0x40] sm:$0xff] %v2498_v40 }
 0x631   : > { %1912 = vst [vmem:[%s3505_s26 + $0x58] sm:$0xff] %v2500_v62 }
 0x632   : > { %v2502_v25 = vpop.eup %2501 }
 0x633   : > { %1910 = vst [vmem:[%s3505_s26 + $0x48] sm:$0xff] %v2502_v25 }
 0x635   : > { %v2504_v26 = vpop.eup %2503 }
 0x636   : > { %1915 = vst [vmem:[%s3505_s26 + $0x70] sm:$0xff] %v2504_v26 }
 0x637   : > { %v2506_v27 = vpop.eup %2505 }
 0x638   : > { %v2508_v6 = vpop.eup %2507  ;;  %1913 = vst [vmem:[%s3505_s26 + $0x60] sm:$0xff] %v2506_v27 }
 0x639   : > { %1916 = vst [vmem:[%s3505_s26 + $0x78] sm:$0xff] %v2508_v6 }
 0x63a   : > { %v2510_v29 = vpop.eup %2509 }
 0x63b   : > { %1914 = vst [vmem:[%s3505_s26 + $0x68] sm:$0xff] %v2510_v29 }
 0x63c   : > { %2576 = shalt.err (!%p2573_p3)
}
 0x63d   : > { %s2577_s23 = scalar_lea.hbm %s3526_s19, 2048  ;;  %s2581_s26 = scalar_lea.hbm %s3582_s8, 4096 }
 0x63e   : > { %p2578_p2 = scmp.ne.s32.totalorder %s3526_s19, %s2577_s23  ;;  %p2582_p7 = scmp.lt.s32.totalorder %s3526_s19, %s3582_s8 }
 0x63f   : > { %p2583_p6 = scmp.lt.s32.totalorder %s2581_s26, %s2577_s23 }
 0x640   : > { %p2579_p4 = pnand %p2578_p2, %p2728_p5 }
 0x641   : > { %p2584_p9 = por %p2583_p6, %p2582_p7 }
 0x642   : > { %p2580_p13 = pneg %p2579_p4 }
 0x644   : > { %p2585_p10 = pnand %p2584_p9, %p2580_p13 }
 0x646   : > { %2588 = shalt.err (!%p2585_p10)
}
 0x647   : > { %s2643_s18 = smov 128   ;;  %s2644_s17 = smov 8  }
 0x648   : > { %2282 = dma.vmem_to_hbm [thread:$0]  (%p2728_p5), %s3528_s12, 2048, %s3526_s19, %s3534_s9, %s2643_s18, %s2643_s18, %s2644_s17  }
 0x649 PF: > { %p2299_p12 = scmp.ge.s32.totalorder %s2631_s30, 2  ;;  %s1946_s20 = sand.u32 1, %s2619_s27  }
 0x64a   : > { %p3592_p8 = scmp.ne.s32.totalorder %s3585_s16, 0  ;;  %s1947_s21 = scalar_lea.sflag [#allocation4], %s1946_s20 }
 0x64c   : > { %p2292_p11 = pnand %p2299_p12, %p3592_p8 }
 0x64e   : > { %p2293_p0 = pneg %p2292_p11 }
 0x650   : > { %2614 = dma.done.wait (%p2293_p0), %s1947_s21, 2048  }
 0x651   : > { %2616 = vsyncadd (%p2293_p0), %s1947_s21, 4294965248  ;;  %p20_p1 = scmp.ge.s32.totalorder %s2715_s11, 4   ;;  %s3593_s27 = smov %s2623_s28 }
 0x652   : > { %s3594_s28 = smov %s2627_s29  ;;  %s3595_s29 = smov %s2726_s14 }
 0x653   : > { %s3596_s30 = smov %s2715_s11  ;;  %22 = sbr.rel (!%p20_p1) target bundleno = 5 (0x5), region = 99 }
 0x658   :  { %1952 = vsyncpa [#allocation3], 1 }
 0x659   :  { %1954 = vsyncpa [#allocation3 + $0x1], 1 }
 0x65a   :  { %1955 = vsyncpa [#allocation6], 1 }
 0x65b   :  { %1956 = vsyncpa [#allocation4], 1 }
 0x65c   :  { %1958 = vsyncpa [#allocation4 + $0x1], 1 }

</bundles_post_ra>
